<compile_context>
chip_gen: v5e
topology: v5e:2x2
jax: 0.10.0
libtpu: 0.0.40
codegen_flags: <defaults>
</compile_context>

<pallas_src>
import jax
import jax.numpy as jnp
from jax import lax
from jax.experimental import pallas as pl
from jax.experimental.pallas import tpu as pltpu

# ---- synthetic model dims (small, consistent with the forward signature) ----
B = 2          # batch
C = 4          # UNet latent channels
H = W = 16     # spatial
HW = H * W     # flattened spatial tokens (lane axis)
L = 8          # text sequence length
D_TEXT = 32    # raw text-embedding dim (ELLA input)
D_CROSS = 64   # cross-attention context dim (ELLA output)
HIDDEN = 64    # UNet inner hidden dim
TIME_DIM = 32  # sinusoidal timestep-embedding dim


# ---------------------------------------------------------------------------
# Fused Pallas kernel: ELLA (AdaLN LayerNorm + proj) -> mini-UNet block
# ---------------------------------------------------------------------------
def fused_ella_unet_kernel(enc_ref, x_ref, scale_ref, shift_ref,
                           ella_w_ref, ella_b_ref,
                           w_in_ref, bias_in_ref,
                           wq_ref, wk_ref, wv_t_ref, wo_ref,
                           w_out_ref, b_out_ref,
                           out_ref):
    """One batch element per grid step.

    enc_ref:     (L, D_TEXT)       text embeddings (f32)
    x_ref:       (C, HW)           latent tokens, features-major (f32)
    scale_ref:   (1, D_TEXT)       AdaLN scale (timestep-conditioned)
    shift_ref:   (1, D_TEXT)       AdaLN shift
    ella_w_ref:  (D_TEXT, D_CROSS) bf16,  ella_b_ref: (1, D_CROSS) f32
    w_in_ref:    (HIDDEN, C)       bf16 (transposed conv_in weight)
    bias_in_ref: (HIDDEN, 1)       f32  (conv_in bias + UNet time embedding, pre-fused)
    wq_ref:      (HIDDEN, HIDDEN)  bf16 (transposed)
    wk_ref:      (D_CROSS, HIDDEN) bf16
    wv_t_ref:    (HIDDEN, D_CROSS) bf16 (transposed)
    wo_ref:      (HIDDEN, HIDDEN)  bf16 (transposed)
    w_out_ref:   (C, HIDDEN)       bf16 (transposed conv_out weight)
    b_out_ref:   (C, 1)            f32
    out_ref:     (C, HW)
    """
    f32 = jnp.float32
    bf16 = jnp.bfloat16

    # ---------------- ELLA: AdaLN-modulated LayerNorm + projection ----------
    enc = enc_ref[...]                                        # (L, D_TEXT) f32
    mu = jnp.mean(enc, axis=-1, keepdims=True)
    xc = enc - mu
    var = jnp.mean(xc * xc, axis=-1, keepdims=True)
    xn = xc * lax.rsqrt(var + 1e-5)
    mod = xn * (1.0 + scale_ref[...]) + shift_ref[...]        # (L, D_TEXT)
    ctx = jnp.dot(mod.astype(bf16), ella_w_ref[...],
                  preferred_element_type=f32) + ella_b_ref[...]   # (L, D_CROSS) f32
    ctx_b = ctx.astype(bf16)

    # ---------------- mini-UNet in lane-dense (features, HW) layout ---------
    x = x_ref[...]                                            # (C, HW) f32
    # conv_in (1x1) + fused (bias + time embedding) + SiLU
    h = jnp.dot(w_in_ref[...], x.astype(bf16), preferred_element_type=f32)
    h = h + bias_in_ref[...]                                  # (HIDDEN, HW)
    h = h * jax.nn.sigmoid(h)                                 # SiLU, f32 elementwise
    h_b = h.astype(bf16)

    # cross-attention: spatial tokens (lanes) attend to text context
    q = jnp.dot(wq_ref[...], h_b, preferred_element_type=f32)        # (HIDDEN, HW)
    k = jnp.dot(ctx_b, wk_ref[...], preferred_element_type=f32)      # (L, HIDDEN)
    # V directly in (HIDDEN, L) via NT contraction -> no in-kernel transpose.
    v_t = lax.dot_general(wv_t_ref[...], ctx_b,
                          (((1,), (1,)), ((), ())),
                          preferred_element_type=f32)                # (HIDDEN, L)

    s = jnp.dot(k.astype(bf16), q.astype(bf16),
                preferred_element_type=f32) * (HIDDEN ** -0.5)       # (L, HW)
    m = jnp.max(s, axis=0, keepdims=True)                            # (1, HW)
    p = jnp.exp(s - m)                                               # f32
    denom = jnp.sum(p, axis=0, keepdims=True)                        # (1, HW)
    inv = pl.reciprocal(denom, approx=True)                          # EUP slot
    attn = jnp.dot(v_t.astype(bf16), p.astype(bf16),
                   preferred_element_type=f32) * inv                 # (HIDDEN, HW)
    h = h + jnp.dot(wo_ref[...], attn.astype(bf16), preferred_element_type=f32)

    # conv_out (1x1) + residual
    y = jnp.dot(w_out_ref[...], h.astype(bf16),
                preferred_element_type=f32) + b_out_ref[...]         # (C, HW)
    out_ref[...] = (x + y).astype(out_ref.dtype)


# ---------------------------------------------------------------------------
# Plain-JAX glue (tiny scalar-sized computations + parameter setup)
# ---------------------------------------------------------------------------
def timestep_embedding(t, dim):
    half = dim // 2
    freqs = jnp.exp(-jnp.log(10000.0) * jnp.arange(half, dtype=jnp.float32) / half)
    args = jnp.asarray(t, jnp.float32) * freqs
    return jnp.concatenate([jnp.sin(args), jnp.cos(args)], axis=-1)  # (dim,)


def init_params(key):
    ks = jax.random.split(key, 10)

    def w(k, shape, scale=0.05):
        return jax.random.normal(k, shape, jnp.float32) * scale

    return {
        # ELLA timestep conditioning (time_dim -> [scale, shift] over D_TEXT)
        "ella_time_w": w(ks[0], (TIME_DIM, 2 * D_TEXT)),
        "ella_time_b": jnp.zeros((2 * D_TEXT,), jnp.float32),
        "ella_proj_w": w(ks[1], (D_TEXT, D_CROSS)),
        "ella_proj_b": jnp.zeros((1, D_CROSS), jnp.float32),
        # UNet time MLP
        "unet_time_w1": w(ks[2], (TIME_DIM, HIDDEN)),
        "unet_time_b1": jnp.zeros((HIDDEN,), jnp.float32),
        "unet_time_w2": w(ks[3], (HIDDEN, HIDDEN)),
        "unet_time_b2": jnp.zeros((HIDDEN,), jnp.float32),
        # UNet body (stored in canonical / PyTorch-like orientation)
        "w_in": w(ks[4], (C, HIDDEN)),
        "b_in": jnp.zeros((1, HIDDEN), jnp.float32),
        "wq": w(ks[5], (HIDDEN, HIDDEN)),
        "wk": w(ks[6], (D_CROSS, HIDDEN)),
        "wv": w(ks[7], (D_CROSS, HIDDEN)),
        "wo": w(ks[8], (HIDDEN, HIDDEN)),
        "w_out": w(ks[9], (HIDDEN, C)),
        "b_out": jnp.zeros((1, C), jnp.float32),
    }


def ella_proxy_unet_forward(sample, timestep, encoder_hidden_states, params):
    """Equivalent of ELLAProxyUNet.forward (default flexible_max_length_workaround=None)."""
    b, c, hh, ww = sample.shape
    hw = hh * ww
    l, dt = encoder_hidden_states.shape[1], encoder_hidden_states.shape[2]
    bf16 = jnp.bfloat16

    # NCHW -> (B, C, HW): features on sublanes, spatial tokens on lanes.
    # No transpose needed (and none on the way out either).
    x_t = sample.reshape(b, c, hw)

    # --- tiny timestep conditioning (scalar-sized, plain JAX) ---
    temb = jax.nn.silu(timestep_embedding(timestep, TIME_DIM))
    ss = temb @ params["ella_time_w"] + params["ella_time_b"]          # (2*D_TEXT,)
    scale = ss[:dt].reshape(1, dt)
    shift = ss[dt:].reshape(1, dt)

    te = timestep_embedding(timestep, TIME_DIM)
    t = jax.nn.silu(te @ params["unet_time_w1"] + params["unet_time_b1"])
    t = t @ params["unet_time_w2"] + params["unet_time_b2"]            # (HIDDEN,)
    # Fuse conv_in bias with the time embedding -> single per-feature bias.
    bias_in = (params["b_in"].reshape(-1) + t).reshape(HIDDEN, 1)

    # Kernel-oriented (transposed) bf16 weights; biases stay f32.
    ella_w  = params["ella_proj_w"].astype(bf16)    # (D_TEXT, D_CROSS)
    w_in_t  = params["w_in"].T.astype(bf16)         # (HIDDEN, C)
    wq_t    = params["wq"].T.astype(bf16)           # (HIDDEN, HIDDEN)
    wk      = params["wk"].astype(bf16)             # (D_CROSS, HIDDEN)
    wv_t    = params["wv"].T.astype(bf16)           # (HIDDEN, D_CROSS)
    wo_t    = params["wo"].T.astype(bf16)           # (HIDDEN, HIDDEN)
    w_out_t = params["w_out"].T.astype(bf16)        # (C, HIDDEN)
    b_out_c = params["b_out"].reshape(c, 1)         # (C, 1)

    full2d = lambda i: (0, 0)

    out_t = pl.pallas_call(
        fused_ella_unet_kernel,
        out_shape=jax.ShapeDtypeStruct((b, c, hw), jnp.float32),
        grid=(b,),
        in_specs=[
            pl.BlockSpec((None, l, dt), lambda i: (i, 0, 0)),   # encoder_hidden_states
            pl.BlockSpec((None, c, hw), lambda i: (i, 0, 0)),   # latent tokens
            pl.BlockSpec((1, dt), full2d),                      # AdaLN scale
            pl.BlockSpec((1, dt), full2d),                      # AdaLN shift
            pl.BlockSpec((dt, D_CROSS), full2d),                # ella_proj_w
            pl.BlockSpec((1, D_CROSS), full2d),                 # ella_proj_b
            pl.BlockSpec((HIDDEN, c), full2d),                  # w_in (T)
            pl.BlockSpec((HIDDEN, 1), full2d),                  # fused bias_in
            pl.BlockSpec((HIDDEN, HIDDEN), full2d),             # wq (T)
            pl.BlockSpec((D_CROSS, HIDDEN), full2d),            # wk
            pl.BlockSpec((HIDDEN, D_CROSS), full2d),            # wv (T)
            pl.BlockSpec((HIDDEN, HIDDEN), full2d),             # wo (T)
            pl.BlockSpec((c, HIDDEN), full2d),                  # w_out (T)
            pl.BlockSpec((c, 1), full2d),                       # b_out
        ],
        out_specs=pl.BlockSpec((None, c, hw), lambda i: (i, 0, 0)),
        compiler_params=pltpu.CompilerParams(
            dimension_semantics=("parallel",)),  # one batch element per TC on v7x
    )(encoder_hidden_states, x_t, scale, shift,
      ella_w, params["ella_proj_b"],
      w_in_t, bias_in,
      wq_t, wk, wv_t, wo_t,
      w_out_t, b_out_c)

    return out_t.reshape(b, c, hh, ww)


# ---------------------------------------------------------------------------
# Pure-JAX reference (same math, same bf16 matmul rounding) for a sanity check
# ---------------------------------------------------------------------------
def _reference(sample, timestep, enc, params):
    f32, bf16 = jnp.float32, jnp.bfloat16

    def bdot(a, b):
        return jnp.dot(a.astype(bf16), b.astype(bf16), preferred_element_type=f32)

    temb = jax.nn.silu(timestep_embedding(timestep, TIME_DIM))
    ss = temb @ params["ella_time_w"] + params["ella_time_b"]
    scale, shift = ss[:D_TEXT], ss[D_TEXT:]
    mu = jnp.mean(enc, -1, keepdims=True)
    var = jnp.mean((enc - mu) ** 2, -1, keepdims=True)
    xn = (enc - mu) * lax.rsqrt(var + 1e-5)
    mod = xn * (1.0 + scale) + shift
    ctx = bdot(mod, params["ella_proj_w"]) + params["ella_proj_b"]

    b, c, hh, ww = sample.shape
    x = jnp.transpose(sample, (0, 2, 3, 1)).reshape(b, hh * ww, c)
    te = timestep_embedding(timestep, TIME_DIM)
    t = jax.nn.silu(te @ params["unet_time_w1"] + params["unet_time_b1"])
    t = t @ params["unet_time_w2"] + params["unet_time_b2"]
    h = bdot(x, params["w_in"]) + params["b_in"] + t[None, None, :]
    h = h * jax.nn.sigmoid(h)
    q = bdot(h, params["wq"])
    k = bdot(ctx, params["wk"])
    v = bdot(ctx, params["wv"])
    s = jnp.einsum("bqd,bkd->bqk", q.astype(bf16), k.astype(bf16),
                   preferred_element_type=f32) * (HIDDEN ** -0.5)
    m = jnp.max(s, axis=-1, keepdims=True)
    p = jnp.exp(s - m)
    p_sum = jnp.sum(p, axis=-1, keepdims=True)
    attn = jnp.einsum("bqk,bkd->bqd", p.astype(bf16), v.astype(bf16),
                      preferred_element_type=f32) / p_sum
    h = h + bdot(attn, params["wo"])
    y = x + bdot(h, params["w_out"]) + params["b_out"]
    return jnp.transpose(y.reshape(b, hh, ww, c), (0, 3, 1, 2))


if __name__ == "__main__":
    key = jax.random.PRNGKey(0)
    k_sample, k_enc, k_param = jax.random.split(key, 3)

    sample = jax.random.normal(k_sample, (B, C, H, W), jnp.float32)        # NCHW latent
    encoder_hidden_states = jax.random.normal(k_enc, (B, L, D_TEXT), jnp.float32)
    timestep = jnp.float32(500.0)
    params = init_params(k_param)

    fwd = jax.jit(ella_proxy_unet_forward)
    out = jax.block_until_ready(fwd(sample, timestep, encoder_hidden_states, params))
    ref = jax.block_until_ready(_reference(sample, timestep, encoder_hidden_states, params))

    assert out.shape == sample.shape and out.dtype == sample.dtype
    err = float(jnp.max(jnp.abs(out - ref)))
    assert err < 5e-3, f"max abs err {err}"

    print("KERNEL_OK")
</pallas_src>

<mosaic_0001>
module attributes {stable_mosaic.version = 11 : i64} {
  func.func @fused_ella_unet_kernel(%arg0: i32, %arg1: memref<1x8x32xf32, #tpu.memory_space<vmem>>, %arg2: memref<1x4x256xf32, #tpu.memory_space<vmem>>, %arg3: memref<1x32xf32, #tpu.memory_space<vmem>>, %arg4: memref<1x32xf32, #tpu.memory_space<vmem>>, %arg5: memref<32x64xbf16, #tpu.memory_space<vmem>>, %arg6: memref<1x64xf32, #tpu.memory_space<vmem>>, %arg7: memref<64x4xbf16, #tpu.memory_space<vmem>>, %arg8: memref<64x1xf32, #tpu.memory_space<vmem>>, %arg9: memref<64x64xbf16, #tpu.memory_space<vmem>>, %arg10: memref<64x64xbf16, #tpu.memory_space<vmem>>, %arg11: memref<64x64xbf16, #tpu.memory_space<vmem>>, %arg12: memref<64x64xbf16, #tpu.memory_space<vmem>>, %arg13: memref<4x64xbf16, #tpu.memory_space<vmem>>, %arg14: memref<4x1xf32, #tpu.memory_space<vmem>>, %arg15: memref<1x4x256xf32, #tpu.memory_space<vmem>>) attributes {dimension_semantics = [#tpu.dimension_semantics<parallel>], iteration_bounds = array<i64: 2>, scalar_prefetch = 0 : i64, scratch_operands = 0 : i64, tpu.core_type = #tpu.core_type<tc>, window_params = [{transform_indices = @transform_0, window_bounds = array<i64: 1, 8, 32>}, {transform_indices = @transform_1, window_bounds = array<i64: 1, 4, 256>}, {pipeline_mode = #tpu.pipeline_mode<synchronous>, transform_indices = @transform_2, window_bounds = array<i64: 1, 32>}, {pipeline_mode = #tpu.pipeline_mode<synchronous>, transform_indices = @transform_3, window_bounds = array<i64: 1, 32>}, {pipeline_mode = #tpu.pipeline_mode<synchronous>, transform_indices = @transform_4, window_bounds = array<i64: 32, 64>}, {pipeline_mode = #tpu.pipeline_mode<synchronous>, transform_indices = @transform_5, window_bounds = array<i64: 1, 64>}, {pipeline_mode = #tpu.pipeline_mode<synchronous>, transform_indices = @transform_6, window_bounds = array<i64: 64, 4>}, {pipeline_mode = #tpu.pipeline_mode<synchronous>, transform_indices = @transform_7, window_bounds = array<i64: 64, 1>}, {pipeline_mode = #tpu.pipeline_mode<synchronous>, transform_indices = @transform_8, window_bounds = array<i64: 64, 64>}, {pipeline_mode = #tpu.pipeline_mode<synchronous>, transform_indices = @transform_9, window_bounds = array<i64: 64, 64>}, {pipeline_mode = #tpu.pipeline_mode<synchronous>, transform_indices = @transform_10, window_bounds = array<i64: 64, 64>}, {pipeline_mode = #tpu.pipeline_mode<synchronous>, transform_indices = @transform_11, window_bounds = array<i64: 64, 64>}, {pipeline_mode = #tpu.pipeline_mode<synchronous>, transform_indices = @transform_12, window_bounds = array<i64: 4, 64>}, {pipeline_mode = #tpu.pipeline_mode<synchronous>, transform_indices = @transform_13, window_bounds = array<i64: 4, 1>}, {transform_indices = @transform_14, window_bounds = array<i64: 1, 4, 256>}]} {
    %c0 = arith.constant 0 : index
    %c0_0 = arith.constant 0 : index
    %c0_1 = arith.constant 0 : index
    %0 = vector.load %arg1[%c0, %c0_0, %c0_1] : memref<1x8x32xf32, #tpu.memory_space<vmem>>, vector<1x8x32xf32>
    %1 = vector.shape_cast %0 : vector<1x8x32xf32> to vector<8x32xf32>
    %cst = arith.constant dense<0.000000e+00> : vector<8xf32>
    %2 = vector.multi_reduction <add>, %1, %cst [1] : vector<8x32xf32> to vector<8xf32>
    %3 = vector.shape_cast %2 : vector<8xf32> to vector<8x1xf32>
    %cst_2 = arith.constant 3.200000e+01 : f32
    %4 = vector.broadcast %cst_2 : f32 to vector<8x1xf32>
    %5 = arith.divf %3, %4 : vector<8x1xf32>
    %6 = vector.broadcast %5 : vector<8x1xf32> to vector<8x32xf32>
    %7 = arith.subf %1, %6 : vector<8x32xf32>
    %8 = arith.mulf %7, %7 : vector<8x32xf32>
    %cst_3 = arith.constant dense<0.000000e+00> : vector<8xf32>
    %9 = vector.multi_reduction <add>, %8, %cst_3 [1] : vector<8x32xf32> to vector<8xf32>
    %10 = vector.shape_cast %9 : vector<8xf32> to vector<8x1xf32>
    %cst_4 = arith.constant 3.200000e+01 : f32
    %11 = vector.broadcast %cst_4 : f32 to vector<8x1xf32>
    %12 = arith.divf %10, %11 : vector<8x1xf32>
    %cst_5 = arith.constant 9.99999974E-6 : f32
    %13 = vector.broadcast %cst_5 : f32 to vector<8x1xf32>
    %14 = arith.addf %12, %13 : vector<8x1xf32>
    %15 = math.rsqrt %14 : vector<8x1xf32>
    %16 = vector.broadcast %15 : vector<8x1xf32> to vector<8x32xf32>
    %17 = arith.mulf %7, %16 : vector<8x32xf32>
    %c0_6 = arith.constant 0 : index
    %c0_7 = arith.constant 0 : index
    %18 = vector.load %arg3[%c0_6, %c0_7] : memref<1x32xf32, #tpu.memory_space<vmem>>, vector<1x32xf32>
    %cst_8 = arith.constant 1.000000e+00 : f32
    %19 = vector.broadcast %cst_8 : f32 to vector<1x32xf32>
    %20 = arith.addf %19, %18 : vector<1x32xf32>
    %21 = vector.broadcast %20 : vector<1x32xf32> to vector<8x32xf32>
    %22 = arith.mulf %17, %21 : vector<8x32xf32>
    %c0_9 = arith.constant 0 : index
    %c0_10 = arith.constant 0 : index
    %23 = vector.load %arg4[%c0_9, %c0_10] : memref<1x32xf32, #tpu.memory_space<vmem>>, vector<1x32xf32>
    %24 = vector.broadcast %23 : vector<1x32xf32> to vector<8x32xf32>
    %25 = arith.addf %22, %24 : vector<8x32xf32>
    %26 = arith.truncf %25 : vector<8x32xf32> to vector<8x32xbf16>
    %c0_11 = arith.constant 0 : index
    %c0_12 = arith.constant 0 : index
    %27 = vector.load %arg5[%c0_11, %c0_12] : memref<32x64xbf16, #tpu.memory_space<vmem>>, vector<32x64xbf16>
    %cst_13 = arith.constant dense<0.000000e+00> : vector<8x64xf32>
    %28 = tpu.matmul %26, %27, %cst_13 {dimension_numbers = #tpu.dot_dimension_numbers<[1], [0], [0], [1], [0, 0, 1, 1], [], []>} : vector<8x32xbf16>, vector<32x64xbf16>, vector<8x64xf32> -> vector<8x64xf32>
    %c0_14 = arith.constant 0 : index
    %c0_15 = arith.constant 0 : index
    %29 = vector.load %arg6[%c0_14, %c0_15] : memref<1x64xf32, #tpu.memory_space<vmem>>, vector<1x64xf32>
    %30 = vector.broadcast %29 : vector<1x64xf32> to vector<8x64xf32>
    %31 = arith.addf %28, %30 : vector<8x64xf32>
    %32 = arith.truncf %31 : vector<8x64xf32> to vector<8x64xbf16>
    %c0_16 = arith.constant 0 : index
    %c0_17 = arith.constant 0 : index
    %c0_18 = arith.constant 0 : index
    %33 = vector.load %arg2[%c0_16, %c0_17, %c0_18] : memref<1x4x256xf32, #tpu.memory_space<vmem>>, vector<1x4x256xf32>
    %34 = vector.shape_cast %33 : vector<1x4x256xf32> to vector<4x256xf32>
    %c0_19 = arith.constant 0 : index
    %c0_20 = arith.constant 0 : index
    %35 = vector.load %arg7[%c0_19, %c0_20] : memref<64x4xbf16, #tpu.memory_space<vmem>>, vector<64x4xbf16>
    %36 = arith.truncf %34 : vector<4x256xf32> to vector<4x256xbf16>
    %cst_21 = arith.constant dense<0.000000e+00> : vector<64x256xf32>
    %37 = tpu.matmul %35, %36, %cst_21 {dimension_numbers = #tpu.dot_dimension_numbers<[1], [0], [0], [1], [0, 0, 1, 1], [], []>} : vector<64x4xbf16>, vector<4x256xbf16>, vector<64x256xf32> -> vector<64x256xf32>
    %c0_22 = arith.constant 0 : index
    %c0_23 = arith.constant 0 : index
    %38 = vector.load %arg8[%c0_22, %c0_23] : memref<64x1xf32, #tpu.memory_space<vmem>>, vector<64x1xf32>
    %39 = vector.broadcast %38 : vector<64x1xf32> to vector<64x256xf32>
    %40 = arith.addf %37, %39 : vector<64x256xf32>
    %41 = arith.negf %40 : vector<64x256xf32>
    %42 = math.exp %41 : vector<64x256xf32>
    %cst_24 = arith.constant 1.000000e+00 : f32
    %43 = vector.broadcast %cst_24 : f32 to vector<64x256xf32>
    %44 = arith.addf %43, %42 : vector<64x256xf32>
    %45 = arith.divf %43, %44 : vector<64x256xf32>
    %46 = arith.mulf %40, %45 : vector<64x256xf32>
    %47 = arith.truncf %46 : vector<64x256xf32> to vector<64x256xbf16>
    %c0_25 = arith.constant 0 : index
    %c0_26 = arith.constant 0 : index
    %48 = vector.load %arg9[%c0_25, %c0_26] : memref<64x64xbf16, #tpu.memory_space<vmem>>, vector<64x64xbf16>
    %cst_27 = arith.constant dense<0.000000e+00> : vector<64x256xf32>
    %49 = tpu.matmul %48, %47, %cst_27 {dimension_numbers = #tpu.dot_dimension_numbers<[1], [0], [0], [1], [0, 0, 1, 1], [], []>} : vector<64x64xbf16>, vector<64x256xbf16>, vector<64x256xf32> -> vector<64x256xf32>
    %c0_28 = arith.constant 0 : index
    %c0_29 = arith.constant 0 : index
    %50 = vector.load %arg10[%c0_28, %c0_29] : memref<64x64xbf16, #tpu.memory_space<vmem>>, vector<64x64xbf16>
    %cst_30 = arith.constant dense<0.000000e+00> : vector<8x64xf32>
    %51 = tpu.matmul %32, %50, %cst_30 {dimension_numbers = #tpu.dot_dimension_numbers<[1], [0], [0], [1], [0, 0, 1, 1], [], []>} : vector<8x64xbf16>, vector<64x64xbf16>, vector<8x64xf32> -> vector<8x64xf32>
    %c0_31 = arith.constant 0 : index
    %c0_32 = arith.constant 0 : index
    %52 = vector.load %arg11[%c0_31, %c0_32] : memref<64x64xbf16, #tpu.memory_space<vmem>>, vector<64x64xbf16>
    %cst_33 = arith.constant dense<0.000000e+00> : vector<64x8xf32>
    %53 = tpu.matmul %52, %32, %cst_33 {dimension_numbers = #tpu.dot_dimension_numbers<[1], [1], [0], [0], [0, 0, 1, 0], [], []>} : vector<64x64xbf16>, vector<8x64xbf16>, vector<64x8xf32> -> vector<64x8xf32>
    %54 = arith.truncf %51 : vector<8x64xf32> to vector<8x64xbf16>
    %55 = arith.truncf %49 : vector<64x256xf32> to vector<64x256xbf16>
    %cst_34 = arith.constant dense<0.000000e+00> : vector<8x256xf32>
    %56 = tpu.matmul %54, %55, %cst_34 {dimension_numbers = #tpu.dot_dimension_numbers<[1], [0], [0], [1], [0, 0, 1, 1], [], []>} : vector<8x64xbf16>, vector<64x256xbf16>, vector<8x256xf32> -> vector<8x256xf32>
    %cst_35 = arith.constant 1.250000e-01 : f32
    %57 = vector.broadcast %cst_35 : f32 to vector<8x256xf32>
    %58 = arith.mulf %56, %57 : vector<8x256xf32>
    %cst_36 = arith.constant dense<0xFF800000> : vector<256xf32>
    %59 = vector.multi_reduction <maximumf>, %58, %cst_36 [0] : vector<8x256xf32> to vector<256xf32>
    %60 = vector.shape_cast %59 : vector<256xf32> to vector<1x256xf32>
    %61 = vector.broadcast %60 : vector<1x256xf32> to vector<8x256xf32>
    %62 = arith.subf %58, %61 : vector<8x256xf32>
    %63 = math.exp %62 : vector<8x256xf32>
    %cst_37 = arith.constant dense<0.000000e+00> : vector<256xf32>
    %64 = vector.multi_reduction <add>, %63, %cst_37 [0] : vector<8x256xf32> to vector<256xf32>
    %65 = vector.shape_cast %64 : vector<256xf32> to vector<1x256xf32>
    %66 = tpu.reciprocal %65 {approx = true} : vector<1x256xf32> -> vector<1x256xf32>
    %67 = arith.truncf %53 : vector<64x8xf32> to vector<64x8xbf16>
    %68 = arith.truncf %63 : vector<8x256xf32> to vector<8x256xbf16>
    %cst_38 = arith.constant dense<0.000000e+00> : vector<64x256xf32>
    %69 = tpu.matmul %67, %68, %cst_38 {dimension_numbers = #tpu.dot_dimension_numbers<[1], [0], [0], [1], [0, 0, 1, 1], [], []>} : vector<64x8xbf16>, vector<8x256xbf16>, vector<64x256xf32> -> vector<64x256xf32>
    %70 = vector.broadcast %66 : vector<1x256xf32> to vector<64x256xf32>
    %71 = arith.mulf %69, %70 : vector<64x256xf32>
    %c0_39 = arith.constant 0 : index
    %c0_40 = arith.constant 0 : index
    %72 = vector.load %arg12[%c0_39, %c0_40] : memref<64x64xbf16, #tpu.memory_space<vmem>>, vector<64x64xbf16>
    %73 = arith.truncf %71 : vector<64x256xf32> to vector<64x256xbf16>
    %cst_41 = arith.constant dense<0.000000e+00> : vector<64x256xf32>
    %74 = tpu.matmul %72, %73, %cst_41 {dimension_numbers = #tpu.dot_dimension_numbers<[1], [0], [0], [1], [0, 0, 1, 1], [], []>} : vector<64x64xbf16>, vector<64x256xbf16>, vector<64x256xf32> -> vector<64x256xf32>
    %75 = arith.addf %46, %74 : vector<64x256xf32>
    %c0_42 = arith.constant 0 : index
    %c0_43 = arith.constant 0 : index
    %76 = vector.load %arg13[%c0_42, %c0_43] : memref<4x64xbf16, #tpu.memory_space<vmem>>, vector<4x64xbf16>
    %77 = arith.truncf %75 : vector<64x256xf32> to vector<64x256xbf16>
    %cst_44 = arith.constant dense<0.000000e+00> : vector<4x256xf32>
    %78 = tpu.matmul %76, %77, %cst_44 {dimension_numbers = #tpu.dot_dimension_numbers<[1], [0], [0], [1], [0, 0, 1, 1], [], []>} : vector<4x64xbf16>, vector<64x256xbf16>, vector<4x256xf32> -> vector<4x256xf32>
    %c0_45 = arith.constant 0 : index
    %c0_46 = arith.constant 0 : index
    %79 = vector.load %arg14[%c0_45, %c0_46] : memref<4x1xf32, #tpu.memory_space<vmem>>, vector<4x1xf32>
    %80 = vector.broadcast %79 : vector<4x1xf32> to vector<4x256xf32>
    %81 = arith.addf %78, %80 : vector<4x256xf32>
    %82 = arith.addf %34, %81 : vector<4x256xf32>
    %c0_47 = arith.constant 0 : index
    %c0_48 = arith.constant 0 : index
    %c0_49 = arith.constant 0 : index
    %83 = vector.load %arg15[%c0_47, %c0_48, %c0_49] : memref<1x4x256xf32, #tpu.memory_space<vmem>>, vector<1x4x256xf32>
    %84 = vector.shape_cast %83 : vector<1x4x256xf32> to vector<4x256xf32>
    %85 = vector.shape_cast %82 : vector<4x256xf32> to vector<1x4x256xf32>
    tpu.vector_store %arg15[%c0_47, %c0_48, %c0_49], %85 {strides = array<i32>} : memref<1x4x256xf32, #tpu.memory_space<vmem>>, vector<1x4x256xf32>,
    return
  }
  func.func @transform_0(%arg0: i32) -> (i32, i32, i32) {
    %c0_i32 = arith.constant 0 : i32
    %c0_i32_0 = arith.constant 0 : i32
    %c0_i32_1 = arith.constant 0 : i32
    return %arg0, %c0_i32, %c0_i32_0 : i32, i32, i32
  }
  func.func @transform_1(%arg0: i32) -> (i32, i32, i32) {
    %c0_i32 = arith.constant 0 : i32
    %c0_i32_0 = arith.constant 0 : i32
    %c0_i32_1 = arith.constant 0 : i32
    return %arg0, %c0_i32, %c0_i32_0 : i32, i32, i32
  }
  func.func @transform_2(%arg0: i32) -> (i32, i32) {
    %c0_i32 = arith.constant 0 : i32
    %c0_i32_0 = arith.constant 0 : i32
    %c0_i32_1 = arith.constant 0 : i32
    return %c0_i32, %c0_i32_0 : i32, i32
  }
  func.func @transform_3(%arg0: i32) -> (i32, i32) {
    %c0_i32 = arith.constant 0 : i32
    %c0_i32_0 = arith.constant 0 : i32
    %c0_i32_1 = arith.constant 0 : i32
    return %c0_i32, %c0_i32_0 : i32, i32
  }
  func.func @transform_4(%arg0: i32) -> (i32, i32) {
    %c0_i32 = arith.constant 0 : i32
    %c0_i32_0 = arith.constant 0 : i32
    %c0_i32_1 = arith.constant 0 : i32
    return %c0_i32, %c0_i32_0 : i32, i32
  }
  func.func @transform_5(%arg0: i32) -> (i32, i32) {
    %c0_i32 = arith.constant 0 : i32
    %c0_i32_0 = arith.constant 0 : i32
    %c0_i32_1 = arith.constant 0 : i32
    return %c0_i32, %c0_i32_0 : i32, i32
  }
  func.func @transform_6(%arg0: i32) -> (i32, i32) {
    %c0_i32 = arith.constant 0 : i32
    %c0_i32_0 = arith.constant 0 : i32
    %c0_i32_1 = arith.constant 0 : i32
    return %c0_i32, %c0_i32_0 : i32, i32
  }
  func.func @transform_7(%arg0: i32) -> (i32, i32) {
    %c0_i32 = arith.constant 0 : i32
    %c0_i32_0 = arith.constant 0 : i32
    %c0_i32_1 = arith.constant 0 : i32
    return %c0_i32, %c0_i32_0 : i32, i32
  }
  func.func @transform_8(%arg0: i32) -> (i32, i32) {
    %c0_i32 = arith.constant 0 : i32
    %c0_i32_0 = arith.constant 0 : i32
    %c0_i32_1 = arith.constant 0 : i32
    return %c0_i32, %c0_i32_0 : i32, i32
  }
  func.func @transform_9(%arg0: i32) -> (i32, i32) {
    %c0_i32 = arith.constant 0 : i32
    %c0_i32_0 = arith.constant 0 : i32
    %c0_i32_1 = arith.constant 0 : i32
    return %c0_i32, %c0_i32_0 : i32, i32
  }
  func.func @transform_10(%arg0: i32) -> (i32, i32) {
    %c0_i32 = arith.constant 0 : i32
    %c0_i32_0 = arith.constant 0 : i32
    %c0_i32_1 = arith.constant 0 : i32
    return %c0_i32, %c0_i32_0 : i32, i32
  }
  func.func @transform_11(%arg0: i32) -> (i32, i32) {
    %c0_i32 = arith.constant 0 : i32
    %c0_i32_0 = arith.constant 0 : i32
    %c0_i32_1 = arith.constant 0 : i32
    return %c0_i32, %c0_i32_0 : i32, i32
  }
  func.func @transform_12(%arg0: i32) -> (i32, i32) {
    %c0_i32 = arith.constant 0 : i32
    %c0_i32_0 = arith.constant 0 : i32
    %c0_i32_1 = arith.constant 0 : i32
    return %c0_i32, %c0_i32_0 : i32, i32
  }
  func.func @transform_13(%arg0: i32) -> (i32, i32) {
    %c0_i32 = arith.constant 0 : i32
    %c0_i32_0 = arith.constant 0 : i32
    %c0_i32_1 = arith.constant 0 : i32
    return %c0_i32, %c0_i32_0 : i32, i32
  }
  func.func @transform_14(%arg0: i32) -> (i32, i32, i32) {
    %c0_i32 = arith.constant 0 : i32
    %c0_i32_0 = arith.constant 0 : i32
    %c0_i32_1 = arith.constant 0 : i32
    return %arg0, %c0_i32, %c0_i32_0 : i32, i32, i32
  }
}

</mosaic_0001>

<bundles_post_ra>
// kernel: ella_proxy_unet_forward.1
= control target key start
LH: loop header
LB: loop body
LE: loop exit
PB: predicated region body
PF: predicated region fallthrough
CT: control target
= control target key end

     0   :  { %s2044_s29 = smov 0   ;;  %s2808_s0 = inlined_call_operand.vmem [shape: f32[2,8,32], index: 0, kind: input, shape index: {}]   ;;  %s2809_s1 = inlined_call_operand.vmem [shape: f32[2,4,256], index: 1, kind: input, shape index: {}]   ;;  %s2810_s2 = inlined_call_operand.vmem [shape: f32[1,32], index: 2, kind: input, shape index: {}]   ;;  %s2811_s3 = inlined_call_operand.vmem [shape: f32[1,32], index: 3, kind: input, shape index: {}]   ;;  %s2812_s4 = inlined_call_operand.vmem [shape: bf16[32,64], index: 4, kind: input, shape index: {}]   ;;  %s2813_s5 = inlined_call_operand.vmem [shape: f32[1,64], index: 5, kind: input, shape index: {}]   ;;  %s2814_s6 = inlined_call_operand.vmem [shape: bf16[64,4], index: 6, kind: input, shape index: {}]   ;;  %s2815_s7 = inlined_call_operand.vmem [shape: f32[64,1], index: 7, kind: input, shape index: {}]   ;;  %s2816_s8 = inlined_call_operand.vmem [shape: bf16[64,64], index: 8, kind: input, shape index: {}]   ;;  %s2817_s9 = inlined_call_operand.vmem [shape: bf16[64,64], index: 9, kind: input, shape index: {}]   ;;  %s2818_s10 = inlined_call_operand.vmem [shape: bf16[64,64], index: 10, kind: input, shape index: {}]   ;;  %s2819_s11 = inlined_call_operand.vmem [shape: bf16[64,64], index: 11, kind: input, shape index: {}]   ;;  %s2820_s12 = inlined_call_operand.vmem [shape: bf16[4,64], index: 12, kind: input, shape index: {}]   ;;  %s2821_s13 = inlined_call_operand.vmem [shape: f32[4,1], index: 13, kind: input, shape index: {}]   ;;  %s2822_s14 = inlined_call_operand.vmem [shape: f32[2,4,256], index: 14, kind: output, shape index: {}]  }
   0x1 LB: > { %s1685_s30 = sadd.s32 4294967295, %s1965_s29   ;;  %p1689_p0 = scmp.ge.s32.totalorder %s1965_s29, 1  ;;  %s1965_s29 = sphi %s2044_s29, %s24_s29  }
   0x2   : > { %p421_p1 = scmp.lt.s32.totalorder %s1965_s29, 3 }
   0x4   : > { %p422_p2 = pnand %p1689_p0, %p421_p1 }
   0x5   : > { %p471_p3 = scmp.lt.s32.totalorder (!%p422_p2), %s1685_s30, 1 }
   0x6   : > { %425 = sbr.rel (%p422_p2) target bundleno = 1254 (0x4e6), region = 76 }
   0xb   : > { %v1967_v0 = vmov 0   ;;  %v589_v1 = vld [vmem:[%s2815_s7 + $0x30] sm:$0xff]  ;;  %s2878_s30 = smov (!%p471_p3, %s1685_s30), 1  ;;  %vm2823_vm0 = vcmask 261120   ;;  %v590_v5 = vld [vmem:[%s2815_s7 + $0x38] sm:$0xff]  ;;  %vm664_vm1 = vcmask 1041408  }
   0xc   : > { %1878 = vset.pattern.permute.xlu1 %v1967_v0  ;;  %1879 = vset.pattern.permute.xlu2 %v1967_v0  ;;  %s2055_s17 = sshll.u32 %s2878_s30, 3  ;;  %v586_v10 = vld [vmem:[%s2815_s7 + $0x18] sm:$0xff]  ;;  %v1847_v12 = vld [vmem:[%s2814_s6] sm:$0xff]  ;;  %v1848_v14 = vld [vmem:[%s2814_s6 + $0x8] sm:$0xff]  ;;  %vm651_vm2 = vcmask 31744   ;;  %v1968_v21 = vmov 32.0  }
   0xd   : > { %623 = vperm.xlu1 %1878, %v589_v1   ;;  %1880 = vset.pattern.permute.xlu0 %v1967_v0  ;;  %s474_s20 = scalar_lea.vmem %s2808_s0, %s2055_s17  ;;  %s479_s23 = scalar_lea.vmem %s2809_s1, %s2055_s17  ;;  %v587_v15 = vld [vmem:[%s2815_s7 + $0x20] sm:$0xff]  ;;  %v584_v16 = vld [vmem:[%s2815_s7 + $0x8] sm:$0xff]  ;;  %v1849_v17 = vld [vmem:[%s2814_s6 + $0x10] sm:$0xff]  ;;  %1883 = vrcp.f32 %v1968_v21 }
   0xe   : > { %v486_v2 = vld [vmem:[%s474_s20] sm:$0xff]  ;;  %613 = vperm.xlu2 %1879, %v587_v15   ;;  %v588_v18 = vld [vmem:[%s2815_s7 + $0x28] sm:$0xff]  ;;  %v1850_v20 = vld [vmem:[%s2814_s6 + $0x18] sm:$0xff]  ;;  %s484_s24 = scalar_lea.vmem %s2822_s14, %s2055_s17 }
   0xf   : > { %v2065_v3 = vld [vmem:[%s479_s23] sm:$0xff]  ;;  %v488_v4 = vsel %vm2823_vm0, %v486_v2, 0.0  ;;  %v585_v35 = vld [vmem:[%s2815_s7 + $0x10] sm:$0xff] }
  0x10   : > { %576 = vst [vmem:[#allocation1] ss:$2 sm:$0xff] %v2065_v3  ;;  %489 = vadd.xlane.f32.xlu0 %v488_v4  ;;  %v583_v19 = vld [vmem:[%s2815_s7] sm:$0xff] }
  0x11   : > { %v1576_v33 = vld [vmem:[%s2821_s13] sm:$0xf] }
  0x13   : > { %v1884_v22 = vpop.eup %1883 }
  0x14   : > { %v492_v23 = vmul.f32 32.0, %v1884_v22  ;;  %vm496_vm3 = vweird.f32 %v1884_v22 }
  0x15   : > { %628 = vperm.xlu1 %1878, %v590_v5  }
  0x16   : > { %618 = vperm.xlu2 %1879, %v588_v18   ;;  %v493_v24 = vsub.f32 1.0, %v492_v23 }
  0x17   : > { %v577_v6 = vld.sshfl [vmem:[#allocation1] sm:$0xff pattern:$0x75316420]  ;;  %v578_v7 = vld.sshfl [vmem:[#allocation1 + $0x8] sm:$0xff pattern:$0x75316420] }
  0x18   : > { %v581_v8 = vpack.c.bf16 %v577_v6, %v577_v6  ;;  %v582_v9 = vpack.c.bf16 %v578_v7, %v578_v7  ;;  %v494_v25 = vmul.f32 %v1884_v22, %v493_v24 }
  0x1a   : > { %v666_v11 = vsel %vm664_vm1, %v581_v8, 0  ;;  %v669_v13 = vsel %vm664_vm1, %v582_v9, 0  ;;  %v495_v26 = vadd.f32 %v1884_v22, %v494_v25 }
  0x1b   : > { %678 = vmatpush.bf16.msra.mxu1 %v666_v11  ;;  %1867 = vmatpush.bf16.msra.mxu2 %v669_v13 }
  0x1c   : > { %v2107_v27 = vsel %vm496_vm3, %v1884_v22, %v495_v26 }
  0x1d   : > { %608 = vperm.xlu1 %1878, %v586_v10  }
  0x1e   : > { %1720 = vmatmul.msk.bf16.vlgmr.msra.gmra.mxu1 %vm651_vm2, %v1847_v12  ;;  %1725 = vmatmul.msk.bf16.vlgmr.msra.gmra.mxu2 %vm651_vm2, %v1848_v14 }
  0x1f   : > { %707 = vmatpush.bf16.msrb.mxu1 %v669_v13  ;;  %593 = vperm.xlu2 %1879, %v583_v19  }
  0x25   : > { %598 = vperm.xlu1 %1878, %v584_v16  }
  0x27   : > { %1579 = vperm.xlu2 %1879, %v1576_v33  }
  0x2e   : > { %1721 = vmatmul.msk.bf16.gmra.mxu1 %vm651_vm2, %v1848_v14  ;;  %1726 = vmatmul.msk.bf16.gmra.mxu2 %vm651_vm2, %v1849_v17 }
  0x3e   : > { %1722 = vmatmul.msk.bf16.gmra.mxu1 %vm651_vm2, %v1849_v17  ;;  %1727 = vmatmul.msk.bf16.gmra.mxu2 %vm651_vm2, %v1850_v20 }
  0x4e   : > { %1723 = vmatmul.msk.bf16.gmra.mxu1 %vm651_vm2, %v1850_v20 }
  0x5e   : > { %1724 = vmatmul.msk.bf16.vlgmr.msrb.gmra.mxu1 %vm651_vm2, %v1847_v12 }
  0x68   : > { %v614_v42 = vpop.permute.xlu2 %613 }
  0x70   : > { %v619_v50 = vpop.permute.xlu2 %618 }
  0x79   : > { %v2183_v24 = vpop.permute.xlu2 %593 }
  0x7f   : > { %v624_v41 = vpop.permute.xlu1 %623 }
  0x83   : > { %v490_v28 = vpop.xlane.xlu0 %489 }
  0x84   : > { %v498_v29 = vmul.f32 %v2107_v27, %v490_v28 }
  0x86   : > { %v2110_v30 = vsub.f32 %v486_v2, %v498_v29 }
  0x87   : > { %v629_v49 = vpop.permute.xlu1 %628 }
  0x88   : > { %v500_v31 = vmul.f32 %v2110_v30, %v2110_v30 }
  0x8a   : > { %v501_v32 = vsel %vm2823_vm0, %v500_v31, 0.0 }
  0x8b   : > { %502 = vadd.xlane.f32.xlu0 %v501_v32 }
  0x8f   : > { %v609_v59 = vpop.permute.xlu1 %608 }
  0x97   : > { %v2156_v9 = vpop.permute.xlu1 %598 }
  0x9b   : > { %v2118_v34 = vpop.f32.mrf.mxu1 }
  0x9c   : > { %v2193_v33 = vadd.f32 %v2118_v34, %v2183_v24 }
  0x9f   : > { %603 = vperm.xlu0 %1880, %v585_v35  }
  0xa1   : > { %v2123_v37 = vpop.f32.mrf.mxu2 }
  0xa3   : > { %v682_v36 = vpop.f32.mrf.mxu1 }
  0xa4   : > { %v2168_v15 = vadd.f32 %v682_v36, %v2156_v9 }
  0xa6   : > { %v1730_v23 = vmul.f32 -1.442695, %v2168_v15 }
  0xa9   : > { %v716_v39 = vpop.f32.mrf.mxu2 }
  0xaa   : > { %v2185_v25 = vadd.f32 %v716_v39, %v609_v59 }
  0xab   : > { %v2125_v38 = vpop.f32.mrf.mxu1 }
  0xb1   : > { %v719_v43 = vpop.f32.mrf.mxu2 }
  0xb2   : > { %v2129_v45 = vadd.f32 %v719_v43, %v614_v42 }
  0xb3   : > { %v2127_v40 = vpop.f32.mrf.mxu1 }
  0xb4   : > { %v1737_v47 = vmul.f32 -1.442695, %v2129_v45  ;;  %v2198_v39 = vadd.f32 %v2127_v40, %v609_v59 }
  0xb6   : > { %1885 = vpow2.f32 %v1737_v47 }
  0xb9   : > { %v721_v48 = vpop.f32.mrf.mxu2 }
  0xba   : > { %v2135_v52 = vadd.f32 %v721_v48, %v619_v50 }
  0xbb   : > { %v690_v44 = vpop.f32.mrf.mxu1 }
  0xbc   : > { %v2131_v46 = vadd.f32 %v690_v44, %v614_v42  ;;  %v1739_v55 = vmul.f32 -1.442695, %v2135_v52  ;;  %v1886_v57 = vpop.eup %1885 }
  0xbd   : > { %v2141_v62 = vadd.f32 1.0, %v1886_v57 }
  0xbe   : > { %v1736_v51 = vmul.f32 -1.442695, %v2131_v46 }
  0xbf   : > { %vm933_vm4 = vweird.f32 %v2141_v62 }
  0xc0   : > { %1887 = vpow2.f32 %v1736_v51 }
  0xc1   : > { %1889 = vpow2.f32 %v1739_v55  ;;  %v724_v58 = vpop.f32.mrf.mxu2  ;;  %v937_v55 = vand.u32 2147483647, %v2141_v62 }
  0xc2   : > { %v2152_v6 = vadd.f32 %v724_v58, %v624_v41 }
  0xc3   : > { %v692_v53 = vpop.f32.mrf.mxu1  ;;  %vm2275_vm13 = vcmp.eq.f32.partialorder %v937_v55, 8.507059e+37 }
  0xc4   : > { %v2137_v54 = vadd.f32 %v692_v53, %v619_v50  ;;  %v1741_v12 = vmul.f32 -1.442695, %v2152_v6  ;;  %v939_v50 = vand.u32 2147483648, %v2141_v62 }
  0xc6   : > { %v1738_v56 = vmul.f32 -1.442695, %v2137_v54  ;;  %v1888_v61 = vpop.eup %1887 }
  0xc7   : > { %v1890_v63 = vpop.eup %1889  ;;  %v2143_v1 = vadd.f32 1.0, %v1888_v61 }
  0xc8   : > { %1891 = vpow2.f32 %v1738_v56  ;;  %v2146_v2 = vadd.f32 1.0, %v1890_v63 }
  0xc9   : > { %1893 = vrcp.f32 %v2141_v62  ;;  %v726_v8 = vpop.f32.mrf.mxu2  ;;  %v922_v44 = vand.u32 2147483647, %v2143_v1  ;;  %v924_v48 = vand.u32 2147483648, %v2143_v1  ;;  %vm918_vm7 = vweird.f32 %v2143_v1 }
  0xca   : > { %1895 = vrcp.f32 %v2143_v1  ;;  %v2165_v14 = vadd.f32 %v726_v8, %v629_v49  ;;  %vm963_vm6 = vweird.f32 %v2146_v2  ;;  %v969_v56 = vand.u32 2147483648, %v2146_v2 }
  0xcb   : > { %v695_v60 = vpop.f32.mrf.mxu1  ;;  %1897 = vrcp.f32 %v2146_v2  ;;  %v2230_v61 = vor.u32 1.1754944e-38, %v924_v48  ;;  %vm2302_vm3 = vcmp.eq.f32.partialorder %v922_v44, 8.507059e+37 }
  0xcc   : > { %v2150_v5 = vadd.f32 %v695_v60, %v624_v41  ;;  %v1743_v19 = vmul.f32 -1.442695, %v2165_v14  ;;  %v2201_v41 = vmul.f32 -1.442695, %v2185_v25 }
  0xce   : > { %v1892_v0 = vpop.eup %1891  ;;  %v1740_v11 = vmul.f32 -1.442695, %v2150_v5 }
  0xcf   : > { %v2148_v4 = vadd.f32 1.0, %v1892_v0  ;;  %v2159_v10 = vpop.eup %1893 }
  0xd0   : > { %v2170_v16 = vpop.eup %1895  ;;  %v929_v17 = vmul.f32 %v2159_v10, %v2141_v62  ;;  %vm934_vm5 = vweird.f32 %v2159_v10 }
  0xd1   : > { %1899 = vrcp.f32 %v2148_v4  ;;  %v2176_v20 = vpop.eup %1897  ;;  %v914_v26 = vmul.f32 %v2170_v16, %v2143_v1  ;;  %vm2236_vm9 = vmor %vm933_vm4, %vm934_vm5  ;;  %vm919_vm10 = vweird.f32 %v2170_v16  ;;  %vm948_vm11 = vweird.f32 %v2148_v4 }
  0xd2   : > { %1901 = vpow2.f32 %v1740_v11  ;;  %v959_v22 = vmul.f32 %v2176_v20, %v2146_v2  ;;  %v930_v28 = vsub.f32 1.0, %v929_v17  ;;  %vm964_vm8 = vweird.f32 %v2176_v20 }
  0xd3   : > { %v697_v7 = vpop.f32.mrf.mxu1  ;;  %1903 = vpow2.f32 %v1741_v12  ;;  %v915_v43 = vsub.f32 1.0, %v914_v26  ;;  %v2246_v11 = vor.u32 1.1754944e-38, %v939_v50  ;;  %v952_v17 = vand.u32 2147483647, %v2148_v4  ;;  %vm2260_vm12 = vmor %vm963_vm6, %vm964_vm8 }
  0xd4   : > { %v2163_v13 = vadd.f32 %v697_v7, %v629_v49  ;;  %v960_v35 = vsub.f32 1.0, %v959_v22  ;;  %v931_v47 = vmul.f32 %v2159_v10, %v930_v28  ;;  %v967_v7 = vand.u32 2147483647, %v2146_v2 }
  0xd5   : > { %v916_v58 = vmul.f32 %v2170_v16, %v915_v43  ;;  %v2264_v22 = vor.u32 1.1754944e-38, %v969_v56  ;;  %vm2306_vm4 = vcmp.eq.f32.partialorder %v952_v17, 8.507059e+37 }
  0xd6   : > { %v1742_v18 = vmul.f32 -1.442695, %v2163_v13  ;;  %v961_v51 = vmul.f32 %v2176_v20, %v960_v35  ;;  %v2224_v59 = vadd.f32 %v2159_v10, %v931_v47  ;;  %vm2285_vm15 = vcmp.eq.f32.partialorder %v967_v7, 8.507059e+37 }
  0xd7   : > { %v2178_v21 = vpop.eup %1899  ;;  %v2269_v26 = vadd.f32 %v2170_v16, %v916_v58 }
  0xd8   : > { %1905 = vpow2.f32 %v1742_v18  ;;  %v1902_v29 = vpop.eup %1901  ;;  %v944_v31 = vmul.f32 %v2178_v21, %v2148_v4  ;;  %v2250_v62 = vadd.f32 %v2176_v20, %v961_v51  ;;  %v954_v18 = vand.u32 2147483648, %v2148_v4 }
  0xd9   : > { %1907 = vpow2.f32 %v1743_v19  ;;  %v1904_v32 = vpop.eup %1903  ;;  %v2195_v36 = vadd.f32 1.0, %v1902_v29  ;;  %v936_v28 = vsel %vm2236_vm9, %v2159_v10, %v2224_v59  ;;  %vm949_vm14 = vweird.f32 %v2178_v21 }
  0xda   : > { %1909 = vpow2.f32 %v1730_v23  ;;  %v2203_v42 = vadd.f32 1.0, %v1904_v32  ;;  %v945_v40 = vsub.f32 1.0, %v944_v31  ;;  %v966_v47 = vsel %vm2260_vm12, %v2176_v20, %v2250_v62 }
  0xdb   : > { %1911 = vrcp.f32 %v2195_v36  ;;  %vm978_vm5 = vweird.f32 %v2195_v36  ;;  %v984_v55 = vand.u32 2147483648, %v2195_v36  ;;  %v982_v59 = vand.u32 2147483647, %v2195_v36 }
  0xdc   : > { %1913 = vrcp.f32 %v2203_v42  ;;  %v946_v0 = vmul.f32 %v2178_v21, %v945_v40  ;;  %vm993_vm1 = vweird.f32 %v2203_v42  ;;  %v999_v10 = vand.u32 2147483648, %v2203_v42  ;;  %v1846_v40 = vld [vmem:[%s2812_s4 + $0x8] sm:$0xff] }
  0xdd   : > { %v997_v48 = vand.u32 2147483647, %v2203_v42  ;;  %558 = vmatpush.bf16.msra.mxu0 %v1846_v40 }
  0xde   : > { %v1906_v34 = vpop.eup %1905  ;;  %v2283_v31 = vadd.f32 %v2178_v21, %v946_v0  ;;  %v1000_v0 = vor.u32 1.1754944e-38, %v999_v10 }
  0xdf   : > { %v1908_v49 = vpop.eup %1907  ;;  %v2214_v53 = vadd.f32 1.0, %v1906_v34  ;;  %vm2351_vm0 = vcmp.eq.f32.partialorder %v997_v48, 8.507059e+37 }
  0xe0   : > { %v2219_v57 = vadd.f32 1.0, %v1908_v49  ;;  %v2228_v60 = vpop.eup %1909 }
  0xe1   : > { %1915 = vrcp.f32 %v2214_v53  ;;  %v2243_v8 = vpop.eup %1911  ;;  %v2463_v10 = vadd.f32 1.0, %v2228_v60 }
  0xe2   : > { %1917 = vrcp.f32 %v2219_v57  ;;  %v2252_v12 = vpop.eup %1913  ;;  %v974_v23 = vmul.f32 %v2243_v8, %v2195_v36  ;;  %v1029_v20 = vand.u32 2147483648, %v2219_v57  ;;  %vm979_vm6 = vweird.f32 %v2243_v8 }
  0xe3   : > { %v989_v2 = vmul.f32 %v2252_v12, %v2203_v42  ;;  %vm994_vm2 = vweird.f32 %v2252_v12  ;;  %vm1023_vm9 = vweird.f32 %v2219_v57  ;;  %v1027_v7 = vand.u32 2147483647, %v2219_v57 }
  0xe4   : > { %v975_v35 = vsub.f32 1.0, %v974_v23  ;;  %vm2322_vm8 = vmor %vm993_vm1, %vm994_vm2  ;;  %v1030_v36 = vor.u32 1.1754944e-38, %v1029_v20  ;;  %v1014_v20 = vand.u32 2147483648, %v2214_v53  ;;  %1919 = vpow2.f32 %v2201_v41 }
  0xe5   : > { %v990_v34 = vsub.f32 1.0, %v989_v2  ;;  %vm2336_vm1 = vmor %vm978_vm5, %vm979_vm6  ;;  %v1845_v2 = vld [vmem:[%s2812_s4] sm:$0xff]  ;;  %vm1028_vm6 = vcmp.eq.f32.partialorder %v1027_v7, 8.507059e+37 }
  0xe6   : > { %v976_v44 = vmul.f32 %v2243_v8, %v975_v35  ;;  %vm2347_vm2 = vmor %vm918_vm7, %vm919_vm10  ;;  %vm2366_vm7 = vcmp.eq.f32.partialorder %v982_v59, 8.507059e+37  ;;  %559 = vmatpush.bf16.msra.mxu0 %v1845_v2 }
  0xe7   : > { %v2291_v43 = vpop.eup %1915  ;;  %v991_v56 = vmul.f32 %v2252_v12, %v990_v34  ;;  %v985_v34 = vor.u32 1.1754944e-38, %v984_v55  ;;  %vm2359_vm5 = vmor %vm948_vm11, %vm949_vm14  ;;  %vm1008_vm11 = vweird.f32 %v2214_v53 }
  0xe8   : > { %v1918_v49 = vpop.eup %1917  ;;  %v1004_v62 = vmul.f32 %v2291_v43, %v2214_v53  ;;  %v977_v23 = vadd.f32 %v2243_v8, %v976_v44  ;;  %vm1009_vm14 = vweird.f32 %v2291_v43  ;;  %v955_v44 = vor.u32 1.1754944e-38, %v954_v18 }
  0xe9   : > { %v1019_v58 = vmul.f32 %v1918_v49, %v2219_v57  ;;  %v992_v17 = vadd.f32 %v2252_v12, %v991_v56  ;;  %vm1024_vm12 = vweird.f32 %v1918_v49  ;;  %v709_v57 = vpop.f32.mrf.mxu1  ;;  %v951_v18 = vsel %vm2359_vm5, %v2178_v21, %v2283_v31 }
  0xea   : > { %v1005_v40 = vsub.f32 1.0, %v1004_v62  ;;  %vm2374_vm10 = vmor %vm1023_vm9, %vm1024_vm12  ;;  %v981_v55 = vsel %vm2336_vm1, %v2243_v8, %v977_v23  ;;  %v921_v62 = vsel %vm2347_vm2, %v2170_v16, %v2269_v26  ;;  %v941_v8 = vsel %vm2275_vm13, %v2246_v11, %v936_v28 }
  0xeb   : > { %v1020_v19 = vsub.f32 1.0, %v1019_v58  ;;  %v996_v1 = vsel %vm2322_vm8, %v2252_v12, %v992_v17  ;;  %v1012_v12 = vand.u32 2147483647, %v2214_v53  ;;  %v986_v16 = vsel %vm2366_vm7, %v985_v34, %v981_v55  ;;  %v517_v55 = vld [vmem:[%s2810_s2] sm:$0x1] }
  0xec   : > { %v1001_v59 = vsel %vm2351_vm0, %v1000_v0, %v996_v1  ;;  %v1006_v17 = vmul.f32 %v2291_v43, %v1005_v40  ;;  %v971_v0 = vsel %vm2285_vm15, %v2264_v22, %v966_v47  ;;  %vm2407_vm0 = vmor %vm1008_vm11, %vm1009_vm14  ;;  %v1015_v26 = vor.u32 1.1754944e-38, %v1014_v20 }
  0xed   : > { %v1021_v58 = vmul.f32 %v1918_v49, %v1020_v19  ;;  %v2412_v21 = vmul.f32 %v1001_v59, %v2152_v6  ;;  %vm1013_vm13 = vcmp.eq.f32.partialorder %v1012_v12, 8.507059e+37  ;;  %v1734_v22 = vmul.f32 -1.442695, %v2198_v39 }
  0xee   : > { %v1007_v29 = vadd.f32 %v2291_v43, %v1006_v17  ;;  %v926_v31 = vsel %vm2302_vm3, %v2230_v61, %v921_v62  ;;  %v956_v53 = vsel %vm2306_vm4, %v955_v44, %v951_v18  ;;  %v2425_v47 = vmul.f32 %v941_v8, %v2129_v45 }
  0xef   : > { %v1022_v63 = vadd.f32 %v1918_v49, %v1021_v58  ;;  %v2428_v6 = vmul.f32 %v971_v0, %v2135_v52  ;;  %v2434_v19 = vmul.f32 %v986_v16, %v2150_v5  ;;  %v1728_v61 = vmul.f32 -1.442695, %v2193_v33 }
  0xf0   : > { %v2442_v45 = vmul.f32 %v956_v53, %v2137_v54  ;;  %1921 = vpow2.f32 %v1734_v22  ;;  %v1920_v54 = vpop.eup %1919  ;;  %v518_v62 = vadd.f32 1.0, %v517_v55  ;;  %vm828_vm8 = vweird.f32 %v2463_v10 }
  0xf1   : > { %v1026_v7 = vsel %vm2374_vm10, %v1918_v49, %v1022_v63  ;;  %v1011_v49 = vsel %vm2407_vm0, %v2291_v43, %v1007_v29  ;;  %v1054_v41 = vpack.c.bf16 %v2428_v6, %v2425_v47  ;;  %v711_v51 = vpop.f32.mrf.mxu1  ;;  %1923 = vpow2.f32 %v1728_v61 }
  0xf2   : > { %v1031_v28 = vsel %vm1028_vm6, %v1030_v36, %v1026_v7  ;;  %v1016_v50 = vsel %vm1013_vm13, %v1015_v26, %v1011_v49  ;;  %v2459_v42 = vadd.f32 %v711_v51, %v2156_v9  ;;  %v2465_v36 = vadd.f32 1.0, %v1920_v54 }
  0xf3   : > { %v2422_v32 = vmul.f32 %v1031_v28, %v2165_v14  ;;  %v2439_v14 = vmul.f32 %v926_v31, %v2131_v46  ;;  %v2445_v52 = vmul.f32 %v1016_v50, %v2163_v13  ;;  %v2456_v13 = vadd.f32 %v709_v57, %v2183_v24 }
  0xf4   : > { %v1731_v24 = vmul.f32 -1.442695, %v2459_v42  ;;  %v832_v7 = vand.u32 2147483647, %v2463_v10  ;;  %v520_v31 = vperm.slane %v518_v62, 0  ;;  %vm903_vm12 = vweird.f32 %v2465_v36 }
  0xf5   : > { %v1056_v43 = vpack.c.bf16 %v2422_v32, %v2412_v21  ;;  %v1055_v5 = vpack.c.bf16 %v2445_v52, %v2434_v19  ;;  %v1053_v46 = vpack.c.bf16 %v2442_v45, %v2439_v14  ;;  %v1729_v40 = vmul.f32 -1.442695, %v2456_v13 }
  0xf6   : > { %v1922_v35 = vpop.eup %1921  ;;  %vm2518_vm9 = vcmp.eq.f32.partialorder %v832_v7, 8.507059e+37  ;;  %vm2858_vm14 = vcmask 261120  }
  0xf7   : > { %1131 = vmatpush.bf16.msrb.mxu0 %v1056_v43  ;;  %1102 = vmatpush.bf16.msra.mxu3 %v1055_v5  ;;  %v1924_v56 = vpop.eup %1923  ;;  %v2469_v1 = vadd.f32 1.0, %v1922_v35  ;;  %v1881_v5 = vld [vmem:[%s2811_s3] ss:$0 sm:$0xff] }
  0xf9   : > { %vm888_vm5 = vweird.f32 %v2469_v1 }
  0xfb   : > { %1132 = vmatpush.bf16.msrb.mxu0 %v1054_v41  ;;  %1103 = vmatpush.bf16.msra.mxu3 %v1053_v46  ;;  %v834_v41 = vand.u32 2147483648, %v2463_v10 }
  0xfe   : > { %v503_v23 = vpop.xlane.xlu0 %502 }
  0xff   : > { %v504_v2 = vmul.f32 %v503_v23, %v2107_v27  ;;  %v2473_v27 = vadd.f32 1.0, %v1924_v56  ;;  %v892_v56 = vand.u32 2147483647, %v2469_v1 }
 0x101   : > { %v505_v34 = vadd.f32 1e-05, %v504_v2  ;;  %vm2570_vm0 = vcmp.eq.f32.partialorder %v892_v56, 8.507059e+37 }
 0x103   : > { %1925 = vrsqrt.f32 %v505_v34  ;;  %vm512_vm3 = vweird.f32 %v505_v34 }
 0x104   : > { %1927 = vrcp.f32 %v2463_v10 }
 0x105   : > { %1929 = vrcp.f32 %v2465_v36 }
 0x106   : > { %1931 = vpow2.f32 %v1729_v40 }
 0x107   : > { %1933 = vpow2.f32 %v1731_v24  ;;  %v907_v24 = vand.u32 2147483647, %v2465_v36 }
 0x108   : > { %1935 = vrcp.f32 %v2469_v1 }
 0x109   : > { %v1926_v9 = vpop.eup %1925  ;;  %1937 = vrcp.f32 %v2473_v27  ;;  %vm2574_vm13 = vcmp.eq.f32.partialorder %v907_v24, 8.507059e+37 }
 0x10a   : > { %v2476_v60 = vpop.eup %1927  ;;  %v507_v58 = vmul.f32 %v1926_v9, %v505_v34  ;;  %vm513_vm15 = vweird.f32 %v1926_v9 }
 0x10b   : > { %v2479_v48 = vpop.eup %1929  ;;  %v824_v63 = vmul.f32 %v2476_v60, %v2463_v10  ;;  %vm514_vm4 = vmor %vm512_vm3, %vm513_vm15  ;;  %vm829_vm1 = vweird.f32 %v2476_v60  ;;  %vm798_vm15 = vweird.f32 %v2473_v27 }
 0x10c   : > { %v1932_v20 = vpop.eup %1931  ;;  %v508_v4 = vmul.f32 %v1926_v9, %v507_v58  ;;  %v899_v16 = vmul.f32 %v2479_v48, %v2465_v36  ;;  %vm904_vm2 = vweird.f32 %v2479_v48  ;;  %v894_v58 = vand.u32 2147483648, %v2469_v1  ;;  %vm2540_vm10 = vmor %vm828_vm8, %vm829_vm1 }
 0x10d   : > { %v1934_v12 = vpop.eup %1933  ;;  %v2488_v57 = vadd.f32 1.0, %v1932_v20  ;;  %v825_v22 = vsub.f32 1.0, %v824_v63  ;;  %vm2553_vm11 = vmor %vm903_vm12, %vm904_vm2 }
 0x10e   : > { %v2484_v44 = vpop.eup %1935  ;;  %v509_v59 = vmul.f32 0.5, %v508_v4  ;;  %v2492_v18 = vadd.f32 1.0, %v1934_v12  ;;  %v900_v43 = vsub.f32 1.0, %v899_v16 }
 0x10f   : > { %v2490_v8 = vpop.eup %1937  ;;  %v884_v0 = vmul.f32 %v2484_v44, %v2469_v1  ;;  %1939 = vrcp.f32 %v2488_v57  ;;  %v826_v46 = vmul.f32 %v2476_v60, %v825_v22  ;;  %vm889_vm7 = vweird.f32 %v2484_v44 }
 0x110   : > { %v510_v17 = vsub.f32 1.5, %v509_v59  ;;  %v794_v53 = vmul.f32 %v2490_v8, %v2473_v27  ;;  %1941 = vrcp.f32 %v2492_v18  ;;  %v901_v35 = vmul.f32 %v2479_v48, %v900_v43  ;;  %vm2566_vm6 = vmor %vm888_vm5, %vm889_vm7 }
 0x111   : > { %v604_v11 = vpop.permute.xlu0 %603  ;;  %v827_v55 = vadd.f32 %v2476_v60, %v826_v46  ;;  %v835_v59 = vor.u32 1.1754944e-38, %v834_v41  ;;  %vm799_vm3 = vweird.f32 %v2490_v8  ;;  %vm813_vm8 = vweird.f32 %v2488_v57 }
 0x112   : > { %v511_v26 = vmul.f32 %v1926_v9, %v510_v17  ;;  %v2500_v28 = vadd.f32 %v2125_v38, %v604_v11  ;;  %v2503_v29 = vadd.f32 %v2123_v37, %v604_v11  ;;  %v885_v38 = vsub.f32 1.0, %v884_v0 }
 0x113   : > { %v902_v7 = vadd.f32 %v2479_v48, %v901_v35  ;;  %v831_v1 = vsel %vm2540_vm10, %v2476_v60, %v827_v55  ;;  %v802_v60 = vand.u32 2147483647, %v2473_v27  ;;  %v819_v35 = vand.u32 2147483648, %v2488_v57 }
 0x114   : > { %v515_v49 = vsel %vm514_vm4, %v1926_v9, %v511_v26  ;;  %v1732_v61 = vmul.f32 -1.442695, %v2500_v28  ;;  %v1733_v50 = vmul.f32 -1.442695, %v2503_v29  ;;  %v886_v2 = vmul.f32 %v2484_v44, %v885_v38  ;;  %vm2595_vm4 = vmor %vm798_vm15, %vm799_vm3 }
 0x115   : > { %v516_v37 = vmul.f32 %v515_v49, %v2110_v30  ;;  %v795_v30 = vsub.f32 1.0, %v794_v53  ;;  %v2523_v23 = vpop.eup %1939  ;;  %v909_v9 = vand.u32 2147483648, %v2465_v36  ;;  %v895_v49 = vor.u32 1.1754944e-38, %v894_v58 }
 0x116   : > { %1943 = vpow2.f32 %v1732_v61  ;;  %v2528_v40 = vpop.eup %1941  ;;  %v809_v63 = vmul.f32 %v2523_v23, %v2488_v57  ;;  %v887_v0 = vadd.f32 %v2484_v44, %v886_v2  ;;  %v906_v43 = vsel %vm2553_vm11, %v2479_v48, %v902_v7 }
 0x117   : > { %1945 = vpow2.f32 %v1733_v50  ;;  %v522_v51 = vmul.f32 %v520_v31, %v516_v37  ;;  %v796_v62 = vmul.f32 %v2490_v8, %v795_v30  ;;  %v839_v16 = vmul.f32 %v2528_v40, %v2492_v18 }
 0x118   : > { %v910_v31 = vor.u32 1.1754944e-38, %v909_v9  ;;  %v810_v61 = vsub.f32 1.0, %v809_v63  ;;  %v804_v50 = vand.u32 2147483648, %v2473_v27  ;;  %v891_v38 = vsel %vm2566_vm6, %v2484_v44, %v887_v0 }
 0x119   : > { %v527_v34 = vadd.f32 %v1881_v5, %v522_v51  ;;  %v840_v37 = vsub.f32 1.0, %v839_v16  ;;  %v797_v5 = vadd.f32 %v2490_v8, %v796_v62  ;;  %v836_v51 = vsel %vm2518_vm9, %v835_v59, %v831_v1 }
 0x11a   : > { %v896_v46 = vsel %vm2570_vm0, %v895_v49, %v891_v38  ;;  %v911_v44 = vsel %vm2574_vm13, %v910_v31, %v906_v43  ;;  %v811_v48 = vmul.f32 %v2523_v23, %v810_v61  ;;  %v817_v30 = vand.u32 2147483647, %v2488_v57 }
 0x11b   : > { %v528_v20 = vpack.c.bf16 %v527_v34, %v527_v34  ;;  %v841_v34 = vmul.f32 %v2528_v40, %v840_v37  ;;  %v801_v27 = vsel %vm2595_vm4, %v2490_v8, %v797_v5  ;;  %v805_v54 = vor.u32 1.1754944e-38, %v804_v50 }
 0x11c   : > { %v1944_v4 = vpop.eup %1943  ;;  %vm814_vm9 = vweird.f32 %v2523_v23  ;;  %vm2616_vm12 = vcmp.eq.f32.partialorder %v802_v60, 8.507059e+37  ;;  %vm843_vm1 = vweird.f32 %v2492_v18  ;;  %vm844_vm2 = vweird.f32 %v2528_v40 }
 0x11d   : > { %v1946_v17 = vpop.eup %1945  ;;  %v2559_v11 = vadd.f32 1.0, %v1944_v4  ;;  %1703 = vmatmul.msk.bf16.vlgmr.msra.gmra.mxu0 %vm2858_vm14, %v528_v20  ;;  %v847_v58 = vand.u32 2147483647, %v2492_v18  ;;  %v812_v20 = vadd.f32 %v2523_v23, %v811_v48  ;;  %vm2625_vm5 = vcmp.eq.f32.partialorder %v817_v30, 8.507059e+37  ;;  %vm2630_vm7 = vmor %vm813_vm8, %vm814_vm9 }
 0x11e   : > { %v2578_v53 = vadd.f32 1.0, %v1946_v17  ;;  %v849_v4 = vand.u32 2147483648, %v2492_v18  ;;  %v820_v59 = vor.u32 1.1754944e-38, %v819_v35  ;;  %v842_v63 = vadd.f32 %v2528_v40, %v841_v34  ;;  %vm2636_vm10 = vmor %vm843_vm1, %vm844_vm2  ;;  %v1853_v34 = vld [vmem:[%s2816_s8 + $0x10] sm:$0xff] }
 0x11f   : > { %1947 = vrcp.f32 %v2559_v11  ;;  %v864_v62 = vand.u32 2147483648, %v2559_v11  ;;  %v862_v10 = vand.u32 2147483647, %v2559_v11  ;;  %vm2642_vm14 = vcmp.eq.f32.partialorder %v847_v58, 8.507059e+37 }
 0x120   : > { %1949 = vrcp.f32 %v2578_v53  ;;  %v879_v18 = vand.u32 2147483648, %v2578_v53  ;;  %v877_v36 = vand.u32 2147483647, %v2578_v53  ;;  %v816_v22 = vsel %vm2630_vm7, %v2523_v23, %v812_v20 }
 0x121   : > { %v850_v31 = vor.u32 1.1754944e-38, %v849_v4  ;;  %vm858_vm0 = vweird.f32 %v2559_v11  ;;  %v846_v1 = vsel %vm2636_vm10, %v2528_v40, %v842_v63  ;;  %v865_v61 = vor.u32 1.1754944e-38, %v864_v62 }
 0x122   : > { %vm873_vm15 = vweird.f32 %v2578_v53  ;;  %v2656_v38 = vmul.f32 %v896_v46, %v2198_v39  ;;  %vm863_vm3 = vcmp.eq.f32.partialorder %v862_v10, 8.507059e+37  ;;  %v880_v23 = vor.u32 1.1754944e-38, %v879_v18 }
 0x123   : > { %vm878_vm8 = vcmp.eq.f32.partialorder %v877_v36, 8.507059e+37  ;;  %v821_v40 = vsel %vm2625_vm5, %v820_v59, %v816_v22  ;;  %v851_v41 = vsel %vm2642_vm14, %v850_v31, %v846_v1  ;;  %v2668_v60 = vmul.f32 %v911_v44, %v2185_v25  ;;  %v1856_v44 = vld [vmem:[%s2817_s9 + $0x8] sm:$0xff] }
 0x124   : > { %v2674_v48 = vmul.f32 %v836_v51, %v2168_v15  ;;  %v2682_v35 = vmul.f32 %v821_v40, %v2456_v13  ;;  %vm1085_vm9 = vcmask 523264   ;;  %v1852_v13 = vld [vmem:[%s2816_s8 + $0x8] sm:$0xff]  ;;  %v1857_v51 = vld [vmem:[%s2817_s9 + $0x10] sm:$0xff]  ;;  %vm1351_vm1 = vcmask 64512  }
 0x125   : > { %v1948_v2 = vpop.eup %1947 }
 0x126   : > { %v1950_v56 = vpop.eup %1949  ;;  %v854_v24 = vmul.f32 %v1948_v2, %v2559_v11  ;;  %vm859_vm11 = vweird.f32 %v1948_v2  ;;  %v806_v11 = vsel %vm2616_vm12, %v805_v54, %v801_v27  ;;  %v1854_v27 = vld [vmem:[%s2816_s8 + $0x18] sm:$0xff]  ;;  %v1855_v54 = vld [vmem:[%s2817_s9] sm:$0xff]  ;;  %vm1364_vm12 = vcmask 1043456  }
 0x127   : > { %v869_v8 = vmul.f32 %v1950_v56, %v2578_v53  ;;  %vm874_vm6 = vweird.f32 %v1950_v56  ;;  %vm860_vm13 = vmor %vm858_vm0, %vm859_vm11 }
 0x128   : > { %v855_v55 = vsub.f32 1.0, %v854_v24  ;;  %vm875_vm4 = vmor %vm873_vm15, %vm874_vm6 }
 0x129   : > { %v870_v17 = vsub.f32 1.0, %v869_v8 }
 0x12a   : > { %v856_v7 = vmul.f32 %v1948_v2, %v855_v55 }
 0x12b   : > { %v871_v26 = vmul.f32 %v1950_v56, %v870_v17 }
 0x12c   : > { %v857_v49 = vadd.f32 %v1948_v2, %v856_v7 }
 0x12d   : > { %v872_v50 = vadd.f32 %v1950_v56, %v871_v26 }
 0x12e   : > { %v861_v43 = vsel %vm860_vm13, %v1948_v2, %v857_v49  ;;  %v2679_v2 = vmul.f32 %v806_v11, %v2193_v33  ;;  %v1851_v33 = vld [vmem:[%s2816_s8] sm:$0xff]  ;;  %v1860_v11 = vld [vmem:[%s2818_s10 + $0x8] sm:$0xff] }
 0x12f   : > { %v866_v37 = vsel %vm863_vm3, %v865_v61, %v861_v43  ;;  %v876_v5 = vsel %vm875_vm4, %v1950_v56, %v872_v50  ;;  %v1882_v56 = vld [vmem:[%s2813_s5] ss:$0 sm:$0xff] }
 0x130   : > { %v881_v53 = vsel %vm878_vm8, %v880_v23, %v876_v5  ;;  %v2665_v39 = vmul.f32 %v866_v37, %v2500_v28  ;;  %v2685_v28 = vmul.f32 %v851_v41, %v2459_v42  ;;  %v1049_v15 = vpack.c.bf16 %v2674_v48, %v2679_v2  ;;  %v1858_v42 = vld [vmem:[%s2817_s9 + $0x18] sm:$0xff]  ;;  %v1859_v5 = vld [vmem:[%s2818_s10] sm:$0xff] }
 0x131   : > { %v2671_v46 = vmul.f32 %v881_v53, %v2503_v29  ;;  %1195 = vmatpush.bf16.msra.mxu1 %v1858_v42  ;;  %v1861_v53 = vld [vmem:[%s2818_s10 + $0x10] sm:$0xff] }
 0x132   : > { %v1051_v30 = vpack.c.bf16 %v2656_v38, %v2665_v39  ;;  %v1050_v29 = vpack.c.bf16 %v2685_v28, %v2682_v35 }
 0x133   : > { %v1052_v25 = vpack.c.bf16 %v2668_v60, %v2671_v46 }
 0x134   : > { %1104 = vmatpush.bf16.msra.mxu3 %v1051_v30 }
 0x135   : > { %1133 = vmatpush.bf16.msrb.mxu0 %v1052_v25  ;;  %1196 = vmatpush.bf16.msra.mxu1 %v1857_v51  ;;  %v1862_v25 = vld [vmem:[%s2818_s10 + $0x18] sm:$0xff] }
 0x138   : > { %1105 = vmatpush.bf16.msra.mxu3 %v1049_v15 }
 0x139   : > { %1134 = vmatpush.bf16.msrb.mxu0 %v1050_v29  ;;  %1197 = vmatpush.bf16.msra.mxu1 %v1856_v44 }
 0x13b   : > { %1760 = vmatmul.msk.bf16.vlgmr.msra.gmra.mxu3 %vm1085_vm9, %v1851_v33 }
 0x13c   : > { %1764 = vmatmul.msk.bf16.vlgmr.msrb.gmra.mxu0 %vm1085_vm9, %v1851_v33 }
 0x13d   : > { %1198 = vmatpush.bf16.msra.mxu1 %v1855_v54 }
 0x14b   : > { %1761 = vmatmul.msk.bf16.gmra.mxu3 %vm1085_vm9, %v1852_v13 }
 0x14c   : > { %1765 = vmatmul.msk.bf16.gmra.mxu0 %vm1085_vm9, %v1852_v13 }
 0x15b   : > { %1762 = vmatmul.msk.bf16.gmra.mxu3 %vm1085_vm9, %v1853_v34 }
 0x15c   : > { %1766 = vmatmul.msk.bf16.gmra.mxu0 %vm1085_vm9, %v1853_v34 }
 0x16b   : > { %1763 = vmatmul.msk.bf16.gmra.mxu3 %vm1085_vm9, %v1854_v27 }
 0x16c   : > { %1767 = vmatmul.msk.bf16.gmra.mxu0 %vm1085_vm9, %v1854_v27 }
 0x19a   : > { %v561_v24 = vpop.f32.mrf.mxu0 }
 0x19b   : > { %v562_v9 = vadd.f32 %v1882_v56, %v561_v24 }
 0x19d   : > { %v565_v58 = vpack.c.bf16 %v562_v9, %v562_v9 }
 0x19f   : > { %1784 = vmatmul.msk.bf16.vlgmr.msra.gmra.mxu1 %vm1085_vm9, %v565_v58  ;;  %v1189_v8 = vsel %vm1085_vm9, %v565_v58, 0 }
 0x1a0   : > { %1251 = vmatpush.bf16.xpose.msrb.mxu2 %v1189_v8 }
 0x1a2   : > { %v563_v20 = vpop.f32.mrf.mxu0 }
 0x1a7   : > { %1801 = vmatmul.msk.bf16.vlgmr.msrb.gmra.mxu2 %vm1085_vm9, %v1859_v5 }
 0x1b7   : > { %1802 = vmatmul.msk.bf16.gmra.mxu2 %vm1085_vm9, %v1860_v11 }
 0x1b9   : > { %v1136_v57 = vpop.f32.mrf.mxu0 }
 0x1be   : > { %v1107_v4 = vpop.f32.mrf.mxu3 }
 0x1c1   : > { %v1138_v55 = vpop.f32.mrf.mxu0 }
 0x1c2   : > { %v1275_v43 = vpack.c.bf16 %v1138_v55, %v1136_v57 }
 0x1c6   : > { %v1109_v12 = vpop.f32.mrf.mxu3 }
 0x1c7   : > { %v1274_v37 = vpack.c.bf16 %v1109_v12, %v1107_v4  ;;  %1803 = vmatmul.msk.bf16.gmra.mxu2 %vm1085_vm9, %v1861_v53 }
 0x1c9   : > { %v1141_v59 = vpop.f32.mrf.mxu0 }
 0x1ce   : > { %v1112_v63 = vpop.f32.mrf.mxu3 }
 0x1d1   : > { %v1143_v62 = vpop.f32.mrf.mxu0 }
 0x1d2   : > { %v1277_v50 = vpack.c.bf16 %v1143_v62, %v1141_v59 }
 0x1d6   : > { %v1114_v17 = vpop.f32.mrf.mxu3 }
 0x1d7   : > { %v1276_v23 = vpack.c.bf16 %v1114_v17, %v1112_v63  ;;  %1804 = vmatmul.msk.bf16.gmra.mxu2 %vm1085_vm9, %v1862_v25 }
 0x1d9   : > { %v1146_v0 = vpop.f32.mrf.mxu0 }
 0x1de   : > { %v1117_v7 = vpop.f32.mrf.mxu3 }
 0x1e1   : > { %v1148_v10 = vpop.f32.mrf.mxu0 }
 0x1e2   : > { %v1279_v31 = vpack.c.bf16 %v1148_v10, %v1146_v0 }
 0x1e6   : > { %v1119_v18 = vpop.f32.mrf.mxu3 }
 0x1e7   : > { %v1278_v61 = vpack.c.bf16 %v1119_v18, %v1117_v7 }
 0x1e9   : > { %v1151_v16 = vpop.f32.mrf.mxu0 }
 0x1ee   : > { %v1122_v26 = vpop.f32.mrf.mxu3 }
 0x1f1   : > { %v1153_v36 = vpop.f32.mrf.mxu0 }
 0x1f2   : > { %v1281_v22 = vpack.c.bf16 %v1153_v36, %v1151_v16 }
 0x1f4   : > { %1302 = vmatpush.bf16.msrb.mxu1 %v1281_v22 }
 0x1f6   : > { %v1124_v49 = vpop.f32.mrf.mxu3 }
 0x1f7   : > { %v1280_v1 = vpack.c.bf16 %v1124_v49, %v1122_v26 }
 0x1f8   : > { %1303 = vmatpush.bf16.msrb.mxu1 %v1279_v31 }
 0x1f9   : > { %1289 = vmatpush.bf16.msrb.mxu3 %v1280_v1 }
 0x1fc   : > { %1304 = vmatpush.bf16.msrb.mxu1 %v1277_v50 }
 0x1fd   : > { %1290 = vmatpush.bf16.msrb.mxu3 %v1278_v61 }
 0x200   : > { %1305 = vmatpush.bf16.msrb.mxu1 %v1275_v43 }
 0x201   : > { %1291 = vmatpush.bf16.msrb.mxu3 %v1276_v23 }
 0x205   : > { %1292 = vmatpush.bf16.msrb.mxu3 %v1274_v37 }
 0x21c   : > { %v1200_v40 = vpop.f32.mrf.mxu1 }
 0x21d   : > { %v1273_v41 = vpack.c.bf16 %v1200_v40, %v1200_v40 }
 0x21f   : > { %1805 = vmatmul.msk.bf16.vlgmr.msrb.gmra.mxu3 %vm1085_vm9, %v1273_v41  ;;  %1806 = vmatmul.msk.bf16.vlgmr.msrb.gmra.mxu1 %vm1085_vm9, %v1273_v41 }
 0x224   : > { %v1202_v30 = vpop.f32.mrf.mxu1 }
 0x22a   : > { %v1253_v42 = vpop.f32.mrf.mxu2 }
 0x232   : > { %v1255_v55 = vpop.f32.mrf.mxu2 }
 0x233   : > { %v1345_v16 = vpack.c.bf16 %v1255_v55, %v1253_v42 }
 0x23a   : > { %v1258_v7 = vpop.f32.mrf.mxu2 }
 0x242   : > { %v1260_v31 = vpop.f32.mrf.mxu2 }
 0x243   : > { %v1346_v1 = vpack.c.bf16 %v1260_v31, %v1258_v7 }
 0x24a   : > { %v1263_v49 = vpop.f32.mrf.mxu2 }
 0x252   : > { %v1265_v61 = vpop.f32.mrf.mxu2 }
 0x253   : > { %v1347_v50 = vpack.c.bf16 %v1265_v61, %v1263_v49 }
 0x25a   : > { %v1268_v43 = vpop.f32.mrf.mxu2 }
 0x262   : > { %v1270_v23 = vpop.f32.mrf.mxu2 }
 0x263   : > { %v1348_v37 = vpack.c.bf16 %v1270_v23, %v1268_v43 }
 0x29c   : > { %v1307_v15 = vpop.f32.mrf.mxu1 }
 0x29d   : > { %v1312_v29 = vmul.f32 0.125, %v1307_v15 }
 0x29f   : > { %v1319_v33 = vrot.slane %v1312_v29, 4 }
 0x2a1   : > { %v1320_v13 = vmax.f32 %v1312_v29, %v1319_v33 }
 0x2a2   : > { %v1294_v51 = vpop.f32.mrf.mxu3 }
 0x2a3   : > { %v1321_v44 = vrot.slane %v1320_v13, 2  ;;  %v1311_v34 = vmul.f32 0.125, %v1294_v51 }
 0x2a4   : > { %v1309_v27 = vpop.f32.mrf.mxu1 }
 0x2a5   : > { %v1322_v54 = vmax.f32 %v1320_v13, %v1321_v44  ;;  %v1313_v56 = vrot.slane %v1311_v34, 4 }
 0x2a7   : > { %v1323_v24 = vrot.slane %v1322_v54, 1  ;;  %v1314_v9 = vmax.f32 %v1311_v34, %v1313_v56 }
 0x2a9   : > { %v1324_v58 = vmax.f32 %v1322_v54, %v1323_v24  ;;  %v1315_v8 = vrot.slane %v1314_v9, 2 }
 0x2aa   : > { %v1296_v20 = vpop.f32.mrf.mxu3 }
 0x2ab   : > { %v1326_v57 = vsub.f32 %v1312_v29, %v1324_v58  ;;  %v1316_v4 = vmax.f32 %v1314_v9, %v1315_v8 }
 0x2ad   : > { %v1329_v12 = vmul.f32 1.442695, %v1326_v57  ;;  %v1317_v59 = vrot.slane %v1316_v4, 1 }
 0x2af   : > { %1951 = vpow2.f32 %v1329_v12  ;;  %v1318_v63 = vmax.f32 %v1316_v4, %v1317_v59 }
 0x2b1   : > { %v1325_v62 = vsub.f32 %v1311_v34, %v1318_v63 }
 0x2b3   : > { %v1327_v17 = vmul.f32 1.442695, %v1325_v62 }
 0x2b5   : > { %v1952_v0 = vpop.eup %1951  ;;  %1953 = vpow2.f32 %v1327_v17 }
 0x2b6   : > { %v1350_v10 = vpack.c.bf16 %v1952_v0, %v1952_v0  ;;  %v1337_v5 = vrot.slane %v1952_v0, 4 }
 0x2b8   : > { %v1369_v18 = vsel %vm1364_vm12, %v1350_v10, 0  ;;  %v1338_v40 = vadd.f32 %v1952_v0, %v1337_v5 }
 0x2b9   : > { %1407 = vmatpush.bf16.msra.mxu3 %v1369_v18 }
 0x2ba   : > { %v1339_v53 = vrot.slane %v1338_v40, 2 }
 0x2bb   : > { %v1954_v26 = vpop.eup %1953 }
 0x2bc   : > { %1811 = vmatmul.msk.bf16.vlgmr.msra.gmra.mxu3 %vm1351_vm1, %v1345_v16  ;;  %v1349_v36 = vpack.c.bf16 %v1954_v26, %v1954_v26  ;;  %v1331_v11 = vrot.slane %v1954_v26, 4  ;;  %v1340_v25 = vadd.f32 %v1339_v53, %v1338_v40 }
 0x2be   : > { %v1366_v22 = vsel %vm1364_vm12, %v1349_v36, 0  ;;  %v1332_v41 = vadd.f32 %v1954_v26, %v1331_v11  ;;  %v1341_v29 = vrot.slane %v1340_v25, 1 }
 0x2bf   : > { %1378 = vmatpush.bf16.msra.mxu0 %v1366_v22 }
 0x2c0   : > { %v1333_v30 = vrot.slane %v1332_v41, 2  ;;  %v1342_v13 = vadd.f32 %v1341_v29, %v1340_v25  ;;  %v1864_v29 = vld [vmem:[%s2819_s11 + $0x8] sm:$0xff] }
 0x2c2   : > { %1807 = vmatmul.msk.bf16.vlgmr.msra.gmra.mxu0 %vm1351_vm1, %v1345_v16  ;;  %v1334_v15 = vadd.f32 %v1333_v30, %v1332_v41  ;;  %1955 = vrcp.f32 %v1342_v13  ;;  %v1866_v13 = vld [vmem:[%s2819_s11 + $0x18] sm:$0xff] }
 0x2c4   : > { %v1335_v33 = vrot.slane %v1334_v15, 1 }
 0x2c6   : > { %v1336_v42 = vadd.f32 %v1335_v33, %v1334_v15  ;;  %v1863_v15 = vld [vmem:[%s2819_s11] sm:$0xff]  ;;  %v1865_v33 = vld [vmem:[%s2819_s11 + $0x10] sm:$0xff] }
 0x2c8   : > { %1957 = vrcp.f32 %v1336_v42  ;;  %v1956_v51 = vpop.eup %1955 }
 0x2cc   : > { %1812 = vmatmul.msk.bf16.gmra.mxu3 %vm1351_vm1, %v1346_v1 }
 0x2ce   : > { %v1958_v44 = vpop.eup %1957 }
 0x2d2   : > { %1808 = vmatmul.msk.bf16.gmra.mxu0 %vm1351_vm1, %v1346_v1 }
 0x2dc   : > { %1813 = vmatmul.msk.bf16.gmra.mxu3 %vm1351_vm1, %v1347_v50 }
 0x2e2   : > { %1809 = vmatmul.msk.bf16.gmra.mxu0 %vm1351_vm1, %v1347_v50 }
 0x2ec   : > { %1814 = vmatmul.msk.bf16.gmra.mxu3 %vm1351_vm1, %v1348_v37 }
 0x2f2   : > { %1810 = vmatmul.msk.bf16.gmra.mxu0 %vm1351_vm1, %v1348_v37 }
 0x33f   : > { %v1380_v34 = vpop.f32.mrf.mxu0  ;;  %v1409_v27 = vpop.f32.mrf.mxu3 }
 0x340   : > { %v1429_v54 = vmul.f32 %v1958_v44, %v1380_v34  ;;  %v1430_v56 = vmul.f32 %v1956_v51, %v1409_v27 }
 0x347   : > { %v1382_v24 = vpop.f32.mrf.mxu0  ;;  %v1411_v9 = vpop.f32.mrf.mxu3 }
 0x348   : > { %v1431_v58 = vmul.f32 %v1958_v44, %v1382_v24  ;;  %v1432_v8 = vmul.f32 %v1956_v51, %v1411_v9 }
 0x34a   : > { %v1453_v20 = vpack.c.bf16 %v1431_v58, %v1429_v54  ;;  %v1454_v57 = vpack.c.bf16 %v1432_v8, %v1430_v56 }
 0x34f   : > { %v1385_v4 = vpop.f32.mrf.mxu0  ;;  %v1414_v55 = vpop.f32.mrf.mxu3 }
 0x350   : > { %v1433_v41 = vmul.f32 %v1958_v44, %v1385_v4  ;;  %v1434_v53 = vmul.f32 %v1956_v51, %v1414_v55 }
 0x357   : > { %v1387_v12 = vpop.f32.mrf.mxu0  ;;  %v1416_v59 = vpop.f32.mrf.mxu3 }
 0x358   : > { %v1435_v37 = vmul.f32 %v1958_v44, %v1387_v12  ;;  %v1436_v5 = vmul.f32 %v1956_v51, %v1416_v59 }
 0x35a   : > { %v1455_v30 = vpack.c.bf16 %v1435_v37, %v1433_v41  ;;  %v1456_v25 = vpack.c.bf16 %v1436_v5, %v1434_v53 }
 0x35f   : > { %v1390_v63 = vpop.f32.mrf.mxu0  ;;  %v1419_v62 = vpop.f32.mrf.mxu3 }
 0x360   : > { %v1437_v43 = vmul.f32 %v1958_v44, %v1390_v63  ;;  %v1438_v23 = vmul.f32 %v1956_v51, %v1419_v62 }
 0x367   : > { %v1392_v17 = vpop.f32.mrf.mxu0  ;;  %v1421_v0 = vpop.f32.mrf.mxu3 }
 0x368   : > { %v1439_v49 = vmul.f32 %v1958_v44, %v1392_v17  ;;  %v1440_v1 = vmul.f32 %v1956_v51, %v1421_v0 }
 0x36a   : > { %v1457_v11 = vpack.c.bf16 %v1439_v49, %v1437_v43  ;;  %v1458_v40 = vpack.c.bf16 %v1440_v1, %v1438_v23  ;;  %v1580_v49 = vpop.permute.xlu2 %1579 }
 0x36f   : > { %v1395_v7 = vpop.f32.mrf.mxu0  ;;  %v1424_v10 = vpop.f32.mrf.mxu3 }
 0x370   : > { %v1441_v26 = vmul.f32 %v1958_v44, %v1395_v7  ;;  %v1442_v36 = vmul.f32 %v1956_v51, %v1424_v10 }
 0x377   : > { %v1397_v18 = vpop.f32.mrf.mxu0  ;;  %v1426_v16 = vpop.f32.mrf.mxu3 }
 0x378   : > { %v1443_v22 = vmul.f32 %v1958_v44, %v1397_v18  ;;  %v1444_v31 = vmul.f32 %v1956_v51, %v1426_v16 }
 0x37a   : > { %v1459_v61 = vpack.c.bf16 %v1443_v22, %v1441_v26  ;;  %v1460_v50 = vpack.c.bf16 %v1444_v31, %v1442_v36 }
 0x37c   : > { %1497 = vmatpush.bf16.msra.mxu1 %v1459_v61  ;;  %1526 = vmatpush.bf16.msra.mxu2 %v1460_v50 }
 0x380   : > { %1498 = vmatpush.bf16.msra.mxu1 %v1457_v11  ;;  %1527 = vmatpush.bf16.msra.mxu2 %v1458_v40 }
 0x384   : > { %1499 = vmatpush.bf16.msra.mxu1 %v1455_v30  ;;  %1528 = vmatpush.bf16.msra.mxu2 %v1456_v25 }
 0x388   : > { %1500 = vmatpush.bf16.msra.mxu1 %v1453_v20  ;;  %1529 = vmatpush.bf16.msra.mxu2 %v1454_v57 }
 0x38b   : > { %1831 = vmatmul.msk.bf16.vlgmr.msra.gmra.mxu1 %vm1085_vm9, %v1863_v15  ;;  %1835 = vmatmul.msk.bf16.vlgmr.msra.gmra.mxu2 %vm1085_vm9, %v1863_v15 }
 0x39b   : > { %1832 = vmatmul.msk.bf16.gmra.mxu1 %vm1085_vm9, %v1864_v29  ;;  %1836 = vmatmul.msk.bf16.gmra.mxu2 %vm1085_vm9, %v1864_v29 }
 0x3ab   : > { %1833 = vmatmul.msk.bf16.gmra.mxu1 %vm1085_vm9, %v1865_v33  ;;  %1837 = vmatmul.msk.bf16.gmra.mxu2 %vm1085_vm9, %v1865_v33 }
 0x3bb   : > { %1834 = vmatmul.msk.bf16.gmra.mxu1 %vm1085_vm9, %v1866_v13  ;;  %1838 = vmatmul.msk.bf16.gmra.mxu2 %vm1085_vm9, %v1866_v13 }
 0x408   : > { %v1502_v42 = vpop.f32.mrf.mxu1 }
 0x409   : > { %v1551_v22 = vadd.f32 %v1502_v42, %v2679_v2 }
 0x40e   : > { %v1531_v51 = vpop.f32.mrf.mxu2 }
 0x410   : > { %v1504_v44 = vpop.f32.mrf.mxu1 }
 0x416   : > { %v1533_v34 = vpop.f32.mrf.mxu2 }
 0x418   : > { %v1507_v27 = vpop.f32.mrf.mxu1 }
 0x419   : > { %v1555_v26 = vadd.f32 %v1507_v27, %v2665_v39 }
 0x41e   : > { %v1536_v54 = vpop.f32.mrf.mxu2 }
 0x420   : > { %v1509_v56 = vpop.f32.mrf.mxu1 }
 0x421   : > { %v1557_v7 = vadd.f32 %v1509_v56, %v2656_v38 }
 0x426   : > { %v1538_v24 = vpop.f32.mrf.mxu2 }
 0x427   : > { %v1558_v38 = vadd.f32 %v1538_v24, %v2668_v60 }
 0x428   : > { %v1512_v9 = vpop.f32.mrf.mxu1 }
 0x429   : > { %v1559_v17 = vadd.f32 %v1512_v9, %v2439_v14 }
 0x42e   : > { %v1541_v58 = vpop.f32.mrf.mxu2 }
 0x42f   : > { %v1560_v14 = vadd.f32 %v1541_v58, %v2425_v47  ;;  %v1567_v47 = vld [vmem:[%s2820_s12] sm:$0x3] }
 0x430   : > { %v1514_v8 = vpop.f32.mrf.mxu1 }
 0x431   : > { %v1561_v63 = vadd.f32 %v1514_v8, %v2442_v45  ;;  %v1553_v45 = vadd.f32 %v1504_v44, %v2674_v48  ;;  %v1552_v48 = vadd.f32 %v1531_v51, %v2682_v35 }
 0x433   : > { %v1572_v10 = vpack.c.bf16 %v1561_v63, %v1559_v17 }
 0x436   : > { %v1543_v20 = vpop.f32.mrf.mxu2 }
 0x438   : > { %v1517_v57 = vpop.f32.mrf.mxu1 }
 0x439   : > { %v1563_v12 = vadd.f32 %v1517_v57, %v2434_v19  ;;  %v1562_v19 = vadd.f32 %v1543_v20, %v2428_v6  ;;  %v1554_v6 = vadd.f32 %v1533_v34, %v2685_v28 }
 0x43b   : > { %v1573_v31 = vpack.c.bf16 %v1562_v19, %v1560_v14  ;;  %v1569_v60 = vpack.c.bf16 %v1554_v6, %v1552_v48 }
 0x43e   : > { %v1546_v4 = vpop.f32.mrf.mxu2 }
 0x43f   : > { %v1564_v18 = vadd.f32 %v1546_v4, %v2412_v21  ;;  %v1568_v21 = vpack.c.bf16 %v1553_v45, %v1551_v22 }
 0x440   : > { %v1519_v55 = vpop.f32.mrf.mxu1 }
 0x441   : > { %v1565_v59 = vadd.f32 %v1519_v55, %v2445_v52  ;;  %v1570_v52 = vpack.c.bf16 %v1557_v7, %v1555_v26 }
 0x443   : > { %v1574_v62 = vpack.c.bf16 %v1565_v59, %v1563_v12 }
 0x445   : > { %1589 = vmatpush.bf16.msrb.mxu0 %v1574_v62 }
 0x446   : > { %v1548_v0 = vpop.f32.mrf.mxu2 }
 0x447   : > { %v1566_v16 = vadd.f32 %v1548_v0, %v2422_v32  ;;  %v1556_v32 = vadd.f32 %v1536_v54, %v2671_v46 }
 0x449   : > { %v1575_v36 = vpack.c.bf16 %v1566_v16, %v1564_v18  ;;  %1590 = vmatpush.bf16.msrb.mxu0 %v1572_v10  ;;  %v1571_v39 = vpack.c.bf16 %v1558_v38, %v1556_v32 }
 0x44b   : > { %1602 = vmatpush.bf16.msrb.mxu3 %v1575_v36 }
 0x44d   : > { %1591 = vmatpush.bf16.msrb.mxu0 %v1570_v52 }
 0x44f   : > { %1603 = vmatpush.bf16.msrb.mxu3 %v1573_v31 }
 0x451   : > { %1592 = vmatpush.bf16.msrb.mxu0 %v1568_v21 }
 0x453   : > { %1604 = vmatpush.bf16.msrb.mxu3 %v1571_v39 }
 0x454   : > { %1839 = vmatmul.msk.bf16.vlgmr.msrb.gmra.mxu0 %vm1085_vm9, %v1567_v47 }
 0x457   : > { %1605 = vmatpush.bf16.msrb.mxu3 %v1569_v60 }
 0x45a   : > { %1840 = vmatmul.msk.bf16.vlgmr.msrb.gmra.mxu3 %vm1085_vm9, %v1567_v47 }
 0x4d1   : > { %v1594_v46 = vpop.f32.mrf.mxu0 }
 0x4d2   : > { %v1595_v61 = vadd.f32 %v1594_v46, %v1580_v49 }
 0x4d9   : > { %v1596_v2 = vpop.f32.mrf.mxu0 }
 0x4dd   : > { %v1607_v28 = vpop.f32.mrf.mxu3 }
 0x4de   : > { %v1608_v1 = vadd.f32 %v1607_v28, %v1580_v49 }
 0x4e0   : > { %v1613_v50 = vrot.slane %v1608_v1, 4 }
 0x4e2   : > { %v1614_v35 = vsel %vm1364_vm12, %v1595_v61, %v1613_v50 }
 0x4e3   : > { %v1616_v43 = vadd.f32 %v1614_v35, %v2065_v3 }
 0x4e5   : > { %1617 = vst [vmem:[%s484_s24] sm:$0xff] %v1616_v43  ;;  %v1609_v23 = vpop.f32.mrf.mxu3 }
 0x4e6 PF: > { %s24_s29 = sadd.s32 1, %s1965_s29  }
 0x4e7   : > { %p21_p4 = scmp.ge.s32.totalorder %s24_s29, 4  }
 0x4e9   :  { %23 = sbr.rel (!%p21_p4) target bundleno = 1 (0x1), region = 109 }

</bundles_post_ra>
